<compile_context>
chip_gen: v5e
topology: v5e:2x2
jax: 0.10.0
libtpu: 0.0.40
codegen_flags: <defaults>
</compile_context>

<pallas_src>
import functools

import jax
import jax.numpy as jnp
from jax.experimental import pallas as pl
from jax.experimental.pallas import tpu as pltpu


# ---------------------------------------------------------------------------
# Generation-aware VMEM budgets.
# ---------------------------------------------------------------------------
def _vmem_capacity_bytes():
    """Physical VMEM per TensorCore; conservative 64 MiB (v7x) fallback."""
    try:
        info = pltpu.get_tpu_info()
        for attr in ("vmem_capacity_bytes", "vmem_size_bytes", "vmem_bytes"):
            v = getattr(info, attr, None)
            if v:
                return int(v)
    except Exception:
        pass
    return 64 * 1024 * 1024


def _budgets():
    cap = _vmem_capacity_bytes()
    # scoped limit: ~48 MiB on v7x (64 MiB phys), ~96 MiB on v5e/v6e (128 MiB)
    vmem_limit = min(100 * 1024 * 1024, cap * 3 // 4)
    # budget for pipelined x blocks / the resident plane (~31% of physical,
    # i.e. ~20 MiB on v7x, ~40 MiB on v5e/v6e), leaving headroom for the
    # compiler, f32 temporaries and double-buffered output tiles.
    block_budget = cap * 5 // 16
    return vmem_limit, block_budget


def _largest_divisor_leq(n, cap):
    cap = max(1, min(n, cap))
    for d in range(cap, 0, -1):
        if n % d == 0:
            return d
    return 1


def _choose_hw_tile(hw, max_lanes):
    """Largest multiple-of-128 divisor of hw that is <= max_lanes (>=512 where
    possible); returns hw itself when it already fits."""
    if hw <= max_lanes:
        return hw
    best, t = 128, 128
    while t <= max_lanes:
        if hw % t == 0:
            best = t
        t += 128
    return best


def _weight_specs(Cr, C):
    return [
        pl.BlockSpec((Cr, C), lambda *_: (0, 0)),
        pl.BlockSpec((1, Cr), lambda *_: (0, 0)),
        pl.BlockSpec((C, Cr), lambda *_: (0, 0)),
        pl.BlockSpec((1, C), lambda *_: (0, 0)),
    ]


def _attention_scale(y, w1, b1, w2, b2):
    """1 + sigmoid(conv_du(y)) on the VPU.

    y: (bn, C); w1: (Cr, C); b1: (1, Cr); w2: (C, Cr); b2: (1, C).
    Cr is tiny, so broadcast-multiply + lane reductions beat two dependent
    MXU matvecs on the serial critical path (and per review this epilogue is
    negligible either way).
    """
    h = jnp.sum(y[:, None, :] * w1[None, :, :], axis=-1) + b1      # (bn, Cr)
    h = jnp.maximum(h, 0.0)                                        # ReLU
    s = jnp.sum(h[:, None, :] * w2[None, :, :], axis=-1) + b2      # (bn, C)
    return 1.0 + jax.nn.sigmoid(s)                                 # "+1" = shortcut


# ---------------------------------------------------------------------------
# Path A -- fused: whole (bn, C, HW) plane per grid step, 2x HBM traffic.
# ---------------------------------------------------------------------------
def _fused_kernel(x_ref, w1_ref, b1_ref, w2_ref, b2_ref, o_ref):
    x = x_ref[...].astype(jnp.float32)               # (bn, C, HW)
    inv_hw = 1.0 / float(x.shape[-1])
    mean = jnp.sum(x, axis=-1) * inv_hw              # (bn, C)
    d = x - mean[:, :, None]
    var = jnp.sum(d * d, axis=-1) * inv_hw           # proper two-pass variance
    y = jnp.sqrt(var) + mean                         # stdv + mean (CCALayer)
    scale = _attention_scale(y, w1_ref[...], b1_ref[...], w2_ref[...], b2_ref[...])
    o_ref[...] = (x * scale[:, :, None]).astype(o_ref.dtype)   # x + x*s == x*(1+s)


# ---------------------------------------------------------------------------
# Path B -- staged: plane resident in VMEM (single HBM read of x), lane-dense
# output tiles streamed out.  x is passed with memory_space=pl.ANY and DMA'd
# manually at the first HW tile of each batch element.
# ---------------------------------------------------------------------------
def _staged_kernel(x_hbm, w1_ref, b1_ref, w2_ref, b2_ref, o_ref,
                   plane, scale_ref, sem, *, hw_valid, hw_pad, thw, n_hw):
    b = pl.program_id(0)
    t = pl.program_id(1)

    @pl.when(t == 0)
    def _():
        cp = pltpu.make_async_copy(x_hbm.at[b], plane.at[0], sem)
        cp.start()
        cp.wait()

        C = plane.shape[1]
        inv_hw = 1.0 / float(hw_valid)

        def body_sum(i, acc):
            off = pl.multiple_of(i * thw, 128)
            return acc + plane[:, :, pl.ds(off, thw)].astype(jnp.float32)

        psum = jax.lax.fori_loop(0, n_hw, body_sum,
                                 jnp.zeros((1, C, thw), jnp.float32))
        mean = jnp.sum(psum, axis=-1) * inv_hw                     # (1, C)

        def body_ssq(i, acc):
            off = pl.multiple_of(i * thw, 128)
            d = plane[:, :, pl.ds(off, thw)].astype(jnp.float32) - mean[:, :, None]
            return acc + d * d

        pssq = jax.lax.fori_loop(0, n_hw, body_ssq,
                                 jnp.zeros((1, C, thw), jnp.float32))
        ssq = jnp.sum(pssq, axis=-1)                               # (1, C)
        # HW was zero-padded to a multiple of 128: each padded zero added
        # (0 - mean)^2 == mean^2 to ssq; remove it analytically (no masking).
        var = jnp.maximum((ssq - float(hw_pad) * mean * mean) * inv_hw, 0.0)
        y = jnp.sqrt(var) + mean
        s = _attention_scale(y, w1_ref[...], b1_ref[...], w2_ref[...], b2_ref[...])
        scale_ref[...] = s[:, :, None]                             # (1, C, 1)

    off = pl.multiple_of(t * thw, 128)
    tile = plane[:, :, pl.ds(off, thw)].astype(jnp.float32)
    o_ref[...] = (tile * scale_ref[...]).astype(o_ref.dtype)


# ---------------------------------------------------------------------------
# Path C -- two-pass fallback for planes that do not fit VMEM even once:
# (1) tiled stats (pilot-shifted variance) + attention, (2) tiled rescale.
# ---------------------------------------------------------------------------
def _stats_kernel(x_ref, w1_ref, b1_ref, w2_ref, b2_ref, scale_ref,
                  sum_ref, ssq_ref, pilot_ref, *, hw_valid, hw_pad, thw):
    t = pl.program_id(1)
    x = x_ref[...].astype(jnp.float32)               # (bn, C, thw)

    @pl.when(t == 0)
    def _():
        # Pilot offset (first tile's mean) avoids E[x^2]-mean^2 cancellation.
        n0 = float(min(thw, hw_valid))
        pilot_ref[...] = jnp.sum(x, axis=-1) / n0
        sum_ref[...] = jnp.zeros_like(sum_ref)
        ssq_ref[...] = jnp.zeros_like(ssq_ref)

    pilot = pilot_ref[...]                           # (bn, C)
    d = x - pilot[:, :, None]
    sum_ref[...] += jnp.sum(x, axis=-1)
    ssq_ref[...] += jnp.sum(d * d, axis=-1)

    @pl.when(t == pl.num_programs(1) - 1)
    def _():
        inv_hw = 1.0 / float(hw_valid)
        mean = sum_ref[...] * inv_hw
        # Padded zeros contributed (0 - pilot)^2 each; remove analytically,
        # then Var = E[(x - p)^2] - (mean - p)^2 (clamped for rounding).
        ssq = ssq_ref[...] - float(hw_pad) * pilot * pilot
        dm = mean - pilot
        var = jnp.maximum(ssq * inv_hw - dm * dm, 0.0)
        y = jnp.sqrt(var) + mean
        scale = _attention_scale(y, w1_ref[...], b1_ref[...],
                                 w2_ref[...], b2_ref[...])
        scale_ref[...] = scale[:, :, None]           # (bn, C, 1)


def _rescale_kernel(x_ref, scale_ref, o_ref):
    x = x_ref[...].astype(jnp.float32)
    o_ref[...] = (x * scale_ref[...]).astype(o_ref.dtype)


# ---------------------------------------------------------------------------
# Wrapper
# ---------------------------------------------------------------------------
def shortcut_cca(x_nchw, w1, b1, w2, b2, *, path=None, hw_tile=None):
    """ShortcutBlock(CCALayer): out = x + cca(x).

    x_nchw: (N, C, H, W)               -- f32 or bf16
    w1: (C//r, C), b1: (C//r,)         -- Conv2d(C, C//r, 1)
    w2: (C, C//r), b2: (C,)            -- Conv2d(C//r, C, 1)
    path: None (auto) | "fused" | "staged" | "two_pass"
    """
    N, C, H, W = x_nchw.shape
    Cr = w1.shape[0]
    HW = H * W
    itemsize = jnp.dtype(x_nchw.dtype).itemsize
    vmem_limit, block_budget = _budgets()

    x3 = x_nchw.reshape(N, C, HW)
    b1r = b1.reshape(1, Cr).astype(jnp.float32)
    b2r = b2.reshape(1, C).astype(jnp.float32)
    w1f = w1.astype(jnp.float32)
    w2f = w2.astype(jnp.float32)

    plane_io = C * HW * itemsize          # one (C, HW) plane in the I/O dtype
    plane_f32 = C * HW * 4                # one (C, HW) plane in f32
    # fused: in + out double-buffered (4x io) + f32 temporaries (x_f32, d)
    fused_need = 4 * plane_io + 2 * plane_f32
    HWp = HW if HW % 128 == 0 else HW + (128 - HW % 128)
    hw_pad = HWp - HW

    if path is None:
        if fused_need <= block_budget:
            path = "fused"
        elif C * HWp * itemsize <= int(block_budget * 0.85):
            path = "staged"
        else:
            path = "two_pass"

    # ---- Path A: fused --------------------------------------------------
    if path == "fused":
        bn = _largest_divisor_leq(N, max(1, block_budget // max(1, fused_need)))
        if bn == N and N >= 2:
            bn = _largest_divisor_leq(N, N // 2)   # >=2 programs for megacore
        nb = N // bn
        out3 = pl.pallas_call(
            _fused_kernel,
            out_shape=jax.ShapeDtypeStruct((N, C, HW), x3.dtype),
            grid_spec=pltpu.PrefetchScalarGridSpec(
                num_scalar_prefetch=0,
                grid=(nb,),
                in_specs=[pl.BlockSpec((bn, C, HW), lambda b: (b, 0, 0))]
                         + _weight_specs(Cr, C),
                out_specs=pl.BlockSpec((bn, C, HW), lambda b: (b, 0, 0)),
            ),
            compiler_params=pltpu.CompilerParams(
                dimension_semantics=("parallel",),
                vmem_limit_bytes=vmem_limit),
        )(x3, w1f, b1r, w2f, b2r)
        return out3.reshape(N, C, H, W)

    # ---- tiled paths need a 128-aligned lane axis ------------------------
    if hw_pad:
        # TODO(synk): fold the pad into the kernels (masked tail tile) to
        # avoid this extra XLA copy for non-128-aligned images.
        x3p = jnp.pad(x3, ((0, 0), (0, 0), (0, hw_pad)))
    else:
        x3p = x3

    # ---- Path B: staged single-read --------------------------------------
    if path == "staged":
        plane_bytes = C * HWp * itemsize
        if hw_tile is not None:
            thw = hw_tile
        else:
            remaining = max(block_budget - plane_bytes, 128 * C * 24)
            max_lanes = max(128, min(4096, (remaining // (C * 24)) // 128 * 128))
            thw = _choose_hw_tile(HWp, max_lanes)
        assert HWp % thw == 0 and thw % 128 == 0
        n_hw = HWp // thw

        kernel = functools.partial(_staged_kernel, hw_valid=HW, hw_pad=hw_pad,
                                   thw=thw, n_hw=n_hw)
        out3p = pl.pallas_call(
            kernel,
            out_shape=jax.ShapeDtypeStruct((N, C, HWp), x3.dtype),
            grid_spec=pltpu.PrefetchScalarGridSpec(
                num_scalar_prefetch=0,
                grid=(N, n_hw),
                in_specs=[pl.BlockSpec(memory_space=pl.ANY)]   # x stays in HBM
                         + _weight_specs(Cr, C),
                out_specs=pl.BlockSpec((1, C, thw), lambda b, t: (b, 0, t)),
                scratch_shapes=[
                    pltpu.VMEM((1, C, HWp), x3.dtype),     # resident plane
                    pltpu.VMEM((1, C, 1), jnp.float32),    # 1 + sigmoid scale
                    pltpu.SemaphoreType.DMA(()),
                ],
            ),
            compiler_params=pltpu.CompilerParams(
                dimension_semantics=("parallel", "arbitrary"),
                vmem_limit_bytes=vmem_limit),
        )(x3p, w1f, b1r, w2f, b2r)
        out3 = out3p[:, :, :HW] if hw_pad else out3p
        return out3.reshape(N, C, H, W)

    # ---- Path C: two-pass fallback (plane does not fit VMEM) --------------
    bn = 1
    if hw_tile is not None:
        thw1 = thw2 = hw_tile
    else:
        # decoupled tile sizing: stats pass has no x-sized output (2 buffers),
        # rescale pass streams in + out (4 buffers).  Aim for >=512 lanes.
        max1 = max(512, min(8192, (block_budget // (2 * bn * C * itemsize)) // 128 * 128))
        max2 = max(512, min(8192, (block_budget // (4 * bn * C * itemsize)) // 128 * 128))
        thw1 = _choose_hw_tile(HWp, max1)
        thw2 = _choose_hw_tile(HWp, max2)
    assert HWp % thw1 == 0 and HWp % thw2 == 0
    n1, n2 = HWp // thw1, HWp // thw2

    scale = pl.pallas_call(
        functools.partial(_stats_kernel, hw_valid=HW, hw_pad=hw_pad, thw=thw1),
        out_shape=jax.ShapeDtypeStruct((N, C, 1), jnp.float32),
        grid_spec=pltpu.PrefetchScalarGridSpec(
            num_scalar_prefetch=0,
            grid=(N // bn, n1),
            in_specs=[pl.BlockSpec((bn, C, thw1), lambda b, t: (b, 0, t))]
                     + _weight_specs(Cr, C),
            out_specs=pl.BlockSpec((bn, C, 1), lambda b, t: (b, 0, 0)),
            scratch_shapes=[pltpu.VMEM((bn, C), jnp.float32)] * 3,
        ),
        compiler_params=pltpu.CompilerParams(
            dimension_semantics=("parallel", "arbitrary"),
            vmem_limit_bytes=vmem_limit),
    )(x3p, w1f, b1r, w2f, b2r)

    out3p = pl.pallas_call(
        _rescale_kernel,
        out_shape=jax.ShapeDtypeStruct((N, C, HWp), x3.dtype),
        grid_spec=pltpu.PrefetchScalarGridSpec(
            num_scalar_prefetch=0,
            grid=(N // bn, n2),
            in_specs=[
                pl.BlockSpec((bn, C, thw2), lambda b, t: (b, 0, t)),
                pl.BlockSpec((bn, C, 1), lambda b, t: (b, 0, 0)),
            ],
            out_specs=pl.BlockSpec((bn, C, thw2), lambda b, t: (b, 0, t)),
        ),
        compiler_params=pltpu.CompilerParams(
            dimension_semantics=("parallel", "parallel"),
            vmem_limit_bytes=vmem_limit),
    )(x3p, scale)

    out3 = out3p[:, :, :HW] if hw_pad else out3p
    return out3.reshape(N, C, H, W)


# ---------------------------------------------------------------------------
# Plain-JAX reference of ShortcutBlock(CCALayer) for a silent sanity check.
# ---------------------------------------------------------------------------
def _reference(x, w1, b1, w2, b2):
    x = x.astype(jnp.float32)
    mean = jnp.mean(x, axis=(2, 3), keepdims=True)
    var = jnp.mean((x - mean) ** 2, axis=(2, 3), keepdims=True)
    y = (jnp.sqrt(var) + mean)[:, :, 0, 0]                      # (N, C)
    h = jnp.maximum(y @ w1.T + b1, 0.0)                         # (N, C//r)
    s = jax.nn.sigmoid(h @ w2.T + b2)                           # (N, C)
    return x + x * s[:, :, None, None]                          # shortcut add


if __name__ == "__main__":
    # channel=64, reduction=16 -> hidden=4 (as in BCRN's CCALayer)
    N, C = 2, 64
    reduction = 16
    Cr = C // reduction

    key = jax.random.PRNGKey(0)
    kx, k1, k2, k3, k4, kx2 = jax.random.split(key, 6)
    x = 0.5 + jax.random.normal(kx, (N, C, 16, 16), dtype=jnp.float32)
    w1 = 0.1 * jax.random.normal(k1, (Cr, C), dtype=jnp.float32)
    b1 = 0.1 * jax.random.normal(k2, (Cr,), dtype=jnp.float32)
    w2 = 0.1 * jax.random.normal(k3, (C, Cr), dtype=jnp.float32)
    b2 = 0.1 * jax.random.normal(k4, (C,), dtype=jnp.float32)

    ref = _reference(x, w1, b1, w2, b2)

    # Path A: fused (auto-selected for this plane size).
    out_fused = jax.block_until_ready(shortcut_cca(x, w1, b1, w2, b2))
    assert out_fused.shape == x.shape
    assert jnp.allclose(out_fused, ref, atol=1e-4, rtol=1e-4)

    # Path B: staged single-read (forced, HW tiled into 2 lane-dense tiles).
    out_staged = jax.block_until_ready(
        shortcut_cca(x, w1, b1, w2, b2, path="staged", hw_tile=128))
    assert jnp.allclose(out_staged, ref, atol=1e-4, rtol=1e-4)

    # Non-128-aligned HW (20x20 -> padded to 512 lanes): staged + two-pass.
    x2 = 0.5 + jax.random.normal(kx2, (1, C, 20, 20), dtype=jnp.float32)
    ref2 = _reference(x2, w1, b1, w2, b2)
    out_staged2 = jax.block_until_ready(
        shortcut_cca(x2, w1, b1, w2, b2, path="staged", hw_tile=128))
    assert jnp.allclose(out_staged2, ref2, atol=1e-4, rtol=1e-4)
    out_two_pass = jax.block_until_ready(
        shortcut_cca(x2, w1, b1, w2, b2, path="two_pass", hw_tile=128))
    assert jnp.allclose(out_two_pass, ref2, atol=1e-4, rtol=1e-4)

    # bf16 activations: I/O stays bf16 (half the HBM bytes), math in f32.
    x_bf16 = x.astype(jnp.bfloat16)
    ref_bf16 = _reference(x_bf16, w1, b1, w2, b2)
    out_bf16 = jax.block_until_ready(shortcut_cca(x_bf16, w1, b1, w2, b2))
    assert out_bf16.dtype == jnp.bfloat16
    assert jnp.allclose(out_bf16.astype(jnp.float32), ref_bf16,
                        atol=2e-2, rtol=2e-2)

    print("KERNEL_OK")
</pallas_src>

<mosaic_0001>
module attributes {stable_mosaic.version = 11 : i64} {
  func.func @_fused_kernel(%arg0: i32, %arg1: memref<1x64x256xf32, #tpu.memory_space<vmem>>, %arg2: memref<4x64xf32, #tpu.memory_space<vmem>>, %arg3: memref<1x4xf32, #tpu.memory_space<vmem>>, %arg4: memref<64x4xf32, #tpu.memory_space<vmem>>, %arg5: memref<1x64xf32, #tpu.memory_space<vmem>>, %arg6: memref<1x64x256xf32, #tpu.memory_space<vmem>>) attributes {dimension_semantics = [#tpu.dimension_semantics<parallel>], iteration_bounds = array<i64: 2>, scalar_prefetch = 0 : i64, scratch_operands = 0 : i64, tpu.core_type = #tpu.core_type<tc>, window_params = [{transform_indices = @transform_0, window_bounds = array<i64: 1, 64, 256>}, {pipeline_mode = #tpu.pipeline_mode<synchronous>, transform_indices = @transform_1, window_bounds = array<i64: 4, 64>}, {pipeline_mode = #tpu.pipeline_mode<synchronous>, transform_indices = @transform_2, window_bounds = array<i64: 1, 4>}, {pipeline_mode = #tpu.pipeline_mode<synchronous>, transform_indices = @transform_3, window_bounds = array<i64: 64, 4>}, {pipeline_mode = #tpu.pipeline_mode<synchronous>, transform_indices = @transform_4, window_bounds = array<i64: 1, 64>}, {transform_indices = @transform_5, window_bounds = array<i64: 1, 64, 256>}]} {
    %c0 = arith.constant 0 : index
    %c0_0 = arith.constant 0 : index
    %c0_1 = arith.constant 0 : index
    %0 = vector.load %arg1[%c0, %c0_0, %c0_1] : memref<1x64x256xf32, #tpu.memory_space<vmem>>, vector<1x64x256xf32>
    %cst = arith.constant dense<0.000000e+00> : vector<1x64xf32>
    %1 = vector.multi_reduction <add>, %0, %cst [2] : vector<1x64x256xf32> to vector<1x64xf32>
    %cst_2 = arith.constant 3.906250e-03 : f32
    %2 = vector.broadcast %cst_2 : f32 to vector<1x64xf32>
    %3 = arith.mulf %1, %2 : vector<1x64xf32>
    %4 = vector.shape_cast %3 : vector<1x64xf32> to vector<1x64x1xf32>
    %5 = vector.broadcast %4 : vector<1x64x1xf32> to vector<1x64x256xf32>
    %6 = arith.subf %0, %5 : vector<1x64x256xf32>
    %7 = arith.mulf %6, %6 : vector<1x64x256xf32>
    %cst_3 = arith.constant dense<0.000000e+00> : vector<1x64xf32>
    %8 = vector.multi_reduction <add>, %7, %cst_3 [2] : vector<1x64x256xf32> to vector<1x64xf32>
    %cst_4 = arith.constant 3.906250e-03 : f32
    %9 = vector.broadcast %cst_4 : f32 to vector<1x64xf32>
    %10 = arith.mulf %8, %9 : vector<1x64xf32>
    %11 = math.sqrt %10 : vector<1x64xf32>
    %12 = arith.addf %11, %3 : vector<1x64xf32>
    %c0_5 = arith.constant 0 : index
    %c0_6 = arith.constant 0 : index
    %13 = vector.load %arg2[%c0_5, %c0_6] : memref<4x64xf32, #tpu.memory_space<vmem>>, vector<4x64xf32>
    %c0_7 = arith.constant 0 : index
    %c0_8 = arith.constant 0 : index
    %14 = vector.load %arg3[%c0_7, %c0_8] : memref<1x4xf32, #tpu.memory_space<vmem>>, vector<1x4xf32>
    %c0_9 = arith.constant 0 : index
    %c0_10 = arith.constant 0 : index
    %15 = vector.load %arg4[%c0_9, %c0_10] : memref<64x4xf32, #tpu.memory_space<vmem>>, vector<64x4xf32>
    %c0_11 = arith.constant 0 : index
    %c0_12 = arith.constant 0 : index
    %16 = vector.load %arg5[%c0_11, %c0_12] : memref<1x64xf32, #tpu.memory_space<vmem>>, vector<1x64xf32>
    %17 = vector.shape_cast %12 : vector<1x64xf32> to vector<1x1x64xf32>
    %18 = vector.shape_cast %13 : vector<4x64xf32> to vector<1x4x64xf32>
    %19 = vector.broadcast %17 : vector<1x1x64xf32> to vector<1x4x64xf32>
    %20 = arith.mulf %19, %18 : vector<1x4x64xf32>
    %cst_13 = arith.constant dense<0.000000e+00> : vector<1x4xf32>
    %21 = vector.multi_reduction <add>, %20, %cst_13 [2] : vector<1x4x64xf32> to vector<1x4xf32>
    %22 = arith.addf %21, %14 : vector<1x4xf32>
    %cst_14 = arith.constant 0.000000e+00 : f32
    %23 = vector.broadcast %cst_14 : f32 to vector<1x4xf32>
    %24 = arith.maximumf %22, %23 : vector<1x4xf32>
    %25 = vector.shape_cast %24 : vector<1x4xf32> to vector<1x1x4xf32>
    %26 = vector.shape_cast %15 : vector<64x4xf32> to vector<1x64x4xf32>
    %27 = vector.broadcast %25 : vector<1x1x4xf32> to vector<1x64x4xf32>
    %28 = arith.mulf %27, %26 : vector<1x64x4xf32>
    %cst_15 = arith.constant dense<0.000000e+00> : vector<1x64xf32>
    %29 = vector.multi_reduction <add>, %28, %cst_15 [2] : vector<1x64x4xf32> to vector<1x64xf32>
    %30 = arith.addf %29, %16 : vector<1x64xf32>
    %31 = arith.negf %30 : vector<1x64xf32>
    %32 = math.exp %31 : vector<1x64xf32>
    %cst_16 = arith.constant 1.000000e+00 : f32
    %33 = vector.broadcast %cst_16 : f32 to vector<1x64xf32>
    %34 = arith.addf %33, %32 : vector<1x64xf32>
    %35 = arith.divf %33, %34 : vector<1x64xf32>
    %cst_17 = arith.constant 1.000000e+00 : f32
    %36 = vector.broadcast %cst_17 : f32 to vector<1x64xf32>
    %37 = arith.addf %36, %35 : vector<1x64xf32>
    %38 = vector.shape_cast %37 : vector<1x64xf32> to vector<1x64x1xf32>
    %39 = vector.broadcast %38 : vector<1x64x1xf32> to vector<1x64x256xf32>
    %40 = arith.mulf %0, %39 : vector<1x64x256xf32>
    %c0_18 = arith.constant 0 : index
    %c0_19 = arith.constant 0 : index
    %c0_20 = arith.constant 0 : index
    %41 = vector.load %arg6[%c0_18, %c0_19, %c0_20] : memref<1x64x256xf32, #tpu.memory_space<vmem>>, vector<1x64x256xf32>
    tpu.vector_store %arg6[%c0_18, %c0_19, %c0_20], %40 {strides = array<i32>} : memref<1x64x256xf32, #tpu.memory_space<vmem>>, vector<1x64x256xf32>,
    return
  }
  func.func @transform_0(%arg0: i32) -> (i32, i32, i32) {
    %c0_i32 = arith.constant 0 : i32
    %c0_i32_0 = arith.constant 0 : i32
    %c0_i32_1 = arith.constant 0 : i32
    return %arg0, %c0_i32, %c0_i32_0 : i32, i32, i32
  }
  func.func @transform_1(%arg0: i32) -> (i32, i32) {
    %c0_i32 = arith.constant 0 : i32
    %c0_i32_0 = arith.constant 0 : i32
    %c0_i32_1 = arith.constant 0 : i32
    return %c0_i32, %c0_i32_0 : i32, i32
  }
  func.func @transform_2(%arg0: i32) -> (i32, i32) {
    %c0_i32 = arith.constant 0 : i32
    %c0_i32_0 = arith.constant 0 : i32
    %c0_i32_1 = arith.constant 0 : i32
    return %c0_i32, %c0_i32_0 : i32, i32
  }
  func.func @transform_3(%arg0: i32) -> (i32, i32) {
    %c0_i32 = arith.constant 0 : i32
    %c0_i32_0 = arith.constant 0 : i32
    %c0_i32_1 = arith.constant 0 : i32
    return %c0_i32, %c0_i32_0 : i32, i32
  }
  func.func @transform_4(%arg0: i32) -> (i32, i32) {
    %c0_i32 = arith.constant 0 : i32
    %c0_i32_0 = arith.constant 0 : i32
    %c0_i32_1 = arith.constant 0 : i32
    return %c0_i32, %c0_i32_0 : i32, i32
  }
  func.func @transform_5(%arg0: i32) -> (i32, i32, i32) {
    %c0_i32 = arith.constant 0 : i32
    %c0_i32_0 = arith.constant 0 : i32
    %c0_i32_1 = arith.constant 0 : i32
    return %arg0, %c0_i32, %c0_i32_0 : i32, i32, i32
  }
}

</mosaic_0001>

<bundles_post_ra>
// kernel: tpu_custom_call.1
= control target key start
LH: loop header
LB: loop body
LE: loop exit
PB: predicated region body
PF: predicated region fallthrough
CT: control target
= control target key end

     0   :  { %10 = vsyncpa [#allocation3], 0  ;;  %s3799_s0 = inlined_call_operand.hbm [shape: f32[2,64,256], index: 0, kind: input, shape index: {}]   ;;  %s3800_s1 = inlined_call_operand.vmem [shape: f32[4,64], index: 1, kind: input, shape index: {}]   ;;  %s3801_s2 = inlined_call_operand.vmem [shape: f32[1,4], index: 2, kind: input, shape index: {}]   ;;  %s3802_s3 = inlined_call_operand.vmem [shape: f32[64,4], index: 3, kind: input, shape index: {}]   ;;  %s3803_s4 = inlined_call_operand.vmem [shape: f32[1,64], index: 4, kind: input, shape index: {}]   ;;  %s3804_s5 = inlined_call_operand.hbm [shape: f32[2,64,256], index: 5, kind: output, shape index: {}]  }
   0x1   :  { %12 = vsyncpa [#allocation3 + $0x1], 0 }
   0x2   :  { %13 = vsyncpa [#allocation4], 0 }
   0x3   :  { %15 = vsyncpa [#allocation4 + $0x1], 0  ;;  %s2670_s18 = smov 0   ;;  %s2672_s19 = smov 0  }
   0x4   :  { %s2674_s20 = smov 0   ;;  %s2676_s21 = smov 0  }
   0x5 LB: > { %s2691_s22 = sadd.s32 4294967295, %s2633_s21   ;;  %s2343_s23 = sadd.s32 4294967294, %s2633_s21   ;;  %s2633_s21 = sphi %s2676_s21, %s3828_s21   ;;  %s2629_s20 = sphi %s2674_s20, %s3827_s20   ;;  %s2625_s19 = sphi %s2672_s19, %s3826_s19   ;;  %s2621_s18 = sphi %s2670_s18, %s3825_s18  }
   0x6   : > { %s2695_s24 = sadd.s32 1, %s2633_s21   ;;  %s28_s25 = sadd.s32 1, %s2629_s20 }
   0x7   : > { %s25_s26 = ssub.s32 %s2633_s21, %s2695_s24  ;;  %p35_p0 = scmp.ne.s32.totalorder %s2629_s20, %s2625_s19 }
   0x8   : > { %p26_p1 = scmp.eq.s32.totalorder %s25_s26, 0  ;;  %p36_p2 = scmp.eq.s32.totalorder %s2633_s21, 0 }
   0x9   : > { %p41_p3 = scmp.ne.s32.totalorder %s2625_s19, %s2621_s18  ;;  %p42_p4 = scmp.eq.s32.totalorder %s2691_s22, 0 }
   0xa   : > { %s2707_s27 = scalar_select %p26_p1, %s2629_s20, %s28_s25  }
   0xb   : > { %p2709_p5 = por %p36_p2, %p35_p0  ;;  %p2713_p6 = por %p42_p4, %p41_p3 }
   0xc   : > { %p149_p7 = scmp.eq.s32.totalorder %s2691_s22, 1  ;;  %p155_p8 = scmp.eq.s32.totalorder %s2343_s23, 1 }
   0xd   : > { %p2379_p10 = scmp.lt.s32.totalorder %s2633_s21, 2  ;;  %s187_s7 = sand.u32 1, %s2629_s20  }
   0xe   : > { %p2720_p11 = por %p149_p7, %p35_p0  ;;  %p2724_p12 = por %p155_p8, %p41_p3 }
   0xf   : > { %s2365_s8 = sshll.u32 %s2633_s21, 7  ;;  %s2346_s9 = sshll.u32 %s187_s7, 7 }
  0x10   : > { %s196_s12 = scalar_lea.hbm %s3799_s0, %s2365_s8  ;;  %s191_s14 = scalar_lea.vmem [#allocation2], %s2346_s9 }
  0x11   : > { %s197_s13 = sshll.u32 %s196_s12, 4  ;;  %s199_s15 = sshll.u32 %s191_s14, 4  ;;  %s198_s13 = int_to_ptr.hbm [resolvable:$true] %s197_s13  ;;  %s200_s15 = int_to_ptr.vmem [resolvable:$true] %s199_s15 }
  0x12   : > { %p2735_p13 = pnand %p2379_p10, %p2709_p5  ;;  %p2349_p0 = scmp.ge.s32.totalorder %s2633_s21, 1 }
  0x13   : > { %p207_p1 = scmp.lt.s32.totalorder %s2633_s21, 3  ;;  %s188_s17 = scalar_lea.sflag [#allocation3], %s187_s7 }
  0x14   : > { %s2537_s23 = sshra.s32 %s198_s13, 4  ;;  %p2541_p3 = pneg %p2735_p13  ;;  %s2538_s23 = int_to_ptr.hbm [resolvable:$true] %s2537_s23 }
  0x15   : > { %s2539_s25 = scalar_lea.hbm %s2538_s23, 128  ;;  %s2544_s28 = scalar_lea.hbm %s3799_s0, 256 }
  0x16   : > { %p2540_p2 = scmp.ne.s32.totalorder %s2538_s23, %s2539_s25  ;;  %p2545_p5 = scmp.lt.s32.totalorder %s2538_s23, %s3799_s0 }
  0x17   : > { %p2546_p8 = scmp.lt.s32.totalorder %s2544_s28, %s2539_s25 }
  0x18   : > { %p2542_p4 = pnand %p2541_p3, %p2540_p2 }
  0x19   : > { %p2547_p10 = por %p2546_p8, %p2545_p5 }
  0x1a   : > { %p2543_p7 = pneg %p2542_p4 }
  0x1c   : > { %p2548_p9 = pnand %p2547_p10, %p2543_p7 }
  0x1e   : > { %2551 = shalt.err (!%p2548_p9)
}
  0x1f   : > { %s2635_s7 = smov 256   ;;  %s2636_s11 = smov 16  }
  0x20   : > { %2374 = dma.hbm_to_vmem [thread:$0]  (!%p2735_p13), %s198_s13, 2048, %s200_s15, %s188_s17, %s2635_s7, %s2635_s7, %s2636_s11  }
  0x21   : > { %p208_p2 = pnand %p2349_p0, %p207_p1 }
  0x23   : > { %211 = sbr.rel (%p208_p2) target bundleno = 1373 (0x55d), region = 40 }
  0x28   : > { %s2756_s12 = sand.u32 1, %s2625_s19  }
  0x29   : > { %s2350_s14 = sshll.u32 %s2756_s12, 7  ;;  %s214_s23 = scalar_lea.sflag [#allocation3], %s2756_s12 }
  0x2a   : > { %s2762_s25 = scalar_lea.vmem [#allocation2], %s2350_s14 }
  0x2b   : > { %2612 = dma.done.wait (%p2713_p6), %s214_s23, 2048  }
  0x2c   : > { %2614 = vsyncadd (%p2713_p6), %s214_s23, 4294965248  ;;  %v3807_v0 = vlaneseq  ;;  %v2777_v3 = vld [vmem:[%s2762_s25 + $0x40] sm:$0xff]  ;;  %v2780_v4 = vld [vmem:[%s2762_s25 + $0x48] sm:$0xff]  ;;  %s3733_s10 = scalar_lea.vmem [#allocation5], %s2350_s14  ;;  %s2366_s14 = sshll.u32 %s2691_s22, 7 }
  0x2d   : > { %v2783_v5 = vld [vmem:[%s2762_s25 + $0x20] sm:$0xff]  ;;  %v273_v6 = vadd.f32 %v2780_v4, %v2777_v3  ;;  %v2788_v7 = vld [vmem:[%s2762_s25 + $0x28] sm:$0xff]  ;;  %v2801_v12 = vld [vmem:[%s2762_s25 + $0x50] sm:$0xff]  ;;  %s2266_s23 = scalar_lea.hbm %s3804_s5, %s2366_s14  ;;  %s2267_s29 = sshll.u32 %s3733_s10, 4  ;;  %s2268_s29 = int_to_ptr.vmem [resolvable:$true] %s2267_s29 }
  0x2e   : > { %v2769_v1 = vshrl.u32 %v3807_v0, 7  ;;  %v2791_v8 = vld [vmem:[%s2762_s25] sm:$0xff]  ;;  %v2794_v9 = vld [vmem:[%s2762_s25 + $0x8] sm:$0xff]  ;;  %v267_v10 = vadd.f32 %v2788_v7, %v2783_v5  ;;  %v2807_v14 = vld [vmem:[%s2762_s25 + $0x58] sm:$0xff]  ;;  %s2269_s13 = sshll.u32 %s2266_s23, 4  ;;  %s2255_s15 = scalar_lea.sflag [#allocation4], %s2756_s12  ;;  %s2270_s13 = int_to_ptr.hbm [resolvable:$true] %s2269_s13 }
  0x2f   : > { %v261_v11 = vadd.f32 %v2794_v9, %v2791_v8  ;;  %274 = vadd.xlane.f32.xlu2 %v273_v6  ;;  %v2810_v15 = vld [vmem:[%s2762_s25 + $0x30] sm:$0xff]  ;;  %v2813_v16 = vld [vmem:[%s2762_s25 + $0x38] sm:$0xff]  ;;  %v276_v19 = vadd.f32 %v2807_v14, %v2801_v12  ;;  %v2835_v24 = vld [vmem:[%s2762_s25 + $0x60] sm:$0xff]  ;;  %s2581_s16 = sshra.s32 %s2270_s13, 4  ;;  %s2587_s8 = scalar_lea.hbm %s3804_s5, 256  ;;  %s2582_s16 = int_to_ptr.hbm [resolvable:$true] %s2581_s16 }
  0x30   : > { %v2772_v2 = vadd.s32 8, %v2769_v1  ;;  %2418 = vset.pattern.permute.xlu1 %v2769_v1  ;;  %v2804_v13 = vadd.s32 16, %v2769_v1  ;;  %v2816_v17 = vld [vmem:[%s2762_s25 + $0x10] sm:$0xff]  ;;  %v2819_v18 = vld [vmem:[%s2762_s25 + $0x18] sm:$0xff]  ;;  %v270_v20 = vadd.f32 %v2813_v16, %v2810_v15  ;;  %v2838_v25 = vld [vmem:[%s2762_s25 + $0x68] sm:$0xff]  ;;  %v2851_v30 = vadd.s32 24, %v2769_v1  ;;  %p2588_p0 = scmp.lt.s32.totalorder %s2582_s16, %s3804_s5 }
  0x31   : > { %268 = vadd.xlane.f32.xlu1 %v267_v10  ;;  %262 = vadd.xlane.f32.xlu0 %v261_v11  ;;  %v264_v21 = vadd.f32 %v2819_v18, %v2816_v17  ;;  %v2829_v22 = vld [vmem:[%s2762_s25 + $0x70] sm:$0xff]  ;;  %v2832_v23 = vld [vmem:[%s2762_s25 + $0x78] sm:$0xff]  ;;  %v279_v27 = vadd.f32 %v2838_v25, %v2835_v24  ;;  %v2847_v28 = vld [vmem:[%s3800_s1] sm:$0xf]  ;;  %v2856_v31 = vadd.s32 32, %v2769_v1  ;;  %v2861_v33 = vadd.s32 40, %v2769_v1 }
  0x32   : > { %2419 = vset.pattern.permute.xlu2 %v2772_v2  ;;  %2420 = vset.pattern.permute.xlu0 %v2804_v13  ;;  %v282_v26 = vadd.f32 %v2832_v23, %v2829_v22  ;;  %v473_v29 = vperm.slane %v2847_v28, 0  ;;  %v522_v32 = vperm.slane %v2847_v28, 1  ;;  %v2865_v34 = vadd.s32 48, %v2769_v1  ;;  %s2583_s22 = scalar_lea.hbm %s2582_s16, 128 }
  0x33   : > { %3816 = vst [vmem:[#allocation8_spill] sm:$0xff] %v2856_v31  ;;  %v2870_v35 = vadd.s32 56, %v2769_v1  ;;  %v571_v36 = vperm.slane %v2847_v28, 2  ;;  %v2909_v61 = vperm.slane %v2847_v28, 3  ;;  %p2584_p6 = scmp.ne.s32.totalorder %s2582_s16, %s2583_s22  ;;  %p2589_p1 = scmp.lt.s32.totalorder %s2587_s8, %s2583_s22 }
  0x34   : > { %3817 = vst [vmem:[#allocation9_spill] sm:$0xff] %v2861_v33 }
  0x35   : > { %3818 = vst [vmem:[#allocation10_spill] sm:$0xff] %v2865_v34  ;;  %p2585_p9 = pnand %p2584_p6, %p2720_p11  ;;  %p2590_p3 = por %p2589_p1, %p2588_p0 }
  0x37   : > { %277 = vadd.xlane.f32.xlu2 %v276_v19  ;;  %p2586_p13 = pneg %p2585_p9 }
  0x39   : > { %271 = vadd.xlane.f32.xlu1 %v270_v20  ;;  %265 = vadd.xlane.f32.xlu0 %v264_v21  ;;  %p2591_p4 = pnand %p2590_p3, %p2586_p13 }
  0x41   : > { %283 = vadd.xlane.f32.xlu1 %v282_v26  ;;  %280 = vadd.xlane.f32.xlu0 %v279_v27 }
  0x4f   : > { %484 = vperm.xlu2 %2419, %v473_v29  }
  0x55   : > { %490 = vperm.xlu0 %2420, %v473_v29  }
  0x57   : > { %2421 = vset.pattern.permute.xlu2 %v2851_v30 }
  0x5a   : > { %478 = vperm.xlu1 %2418, %v473_v29  }
  0x5d   : > { %2427 = vset.pattern.permute.xlu0 %v2772_v2 }
  0x5f   : > { %496 = vperm.xlu2 %2421, %v473_v29  }
  0x62   : > { %2422 = vset.pattern.permute.xlu1 %v2856_v31 }
  0x65   : > { %533 = vperm.xlu0 %2427, %v522_v32  }
  0x67   : > { %2423 = vset.pattern.permute.xlu2 %v2861_v33 }
  0x6a   : > { %502 = vperm.xlu1 %2422, %v473_v29  }
  0x6d   : > { %2432 = vset.pattern.permute.xlu0 %v2865_v34 }
  0x6f   : > { %508 = vperm.xlu2 %2423, %v473_v29  }
  0x72   : > { %2424 = vset.pattern.permute.xlu1 %v2865_v34 }
  0x75   : > { %563 = vperm.xlu0 %2432, %v522_v32  }
  0x77   : > { %2425 = vset.pattern.permute.xlu2 %v2870_v35 }
  0x7a   : > { %514 = vperm.xlu1 %2424, %v473_v29  }
  0x7d   : > { %2437 = vset.pattern.permute.xlu0 %v2851_v30 }
  0x7f   : > { %520 = vperm.xlu2 %2425, %v473_v29  }
  0x82   : > { %2426 = vset.pattern.permute.xlu1 %v2769_v1 }
  0x85   : > { %594 = vperm.xlu0 %2437, %v571_v36  }
  0x87   : > { %2428 = vset.pattern.permute.xlu2 %v2804_v13 }
  0x8a   : > { %527 = vperm.xlu1 %2426, %v522_v32  }
  0x8d   : > { %2446 = vset.pattern.permute.xlu0 %v2861_v33 }
  0x8f   : > { %539 = vperm.xlu2 %2428, %v522_v32  }
  0x92   : > { %2429 = vset.pattern.permute.xlu1 %v2851_v30 }
  0x97   : > { %2430 = vset.pattern.permute.xlu2 %v2856_v31 }
  0x9a   : > { %545 = vperm.xlu1 %2429, %v522_v32  }
  0x9f   : > { %551 = vperm.xlu2 %2430, %v522_v32  }
  0xa2   : > { %2431 = vset.pattern.permute.xlu1 %v2861_v33  ;;  %v275_v42 = vpop.xlane.xlu2 %274 }
  0xa3   : > { %v2884_v43 = vmul.f32 0.00390625, %v275_v42 }
  0xa4   : > { %v269_v37 = vpop.xlane.xlu1 %268  ;;  %v263_v38 = vpop.xlane.xlu0 %262 }
  0xa5   : > { %v301_v49 = vsub.f32 %v2777_v3, %v2884_v43  ;;  %v302_v50 = vsub.f32 %v2780_v4, %v2884_v43  ;;  %v2913_v62 = vmul.f32 0.00390625, %v263_v38 }
  0xa7   : > { %2433 = vset.pattern.permute.xlu2 %v2870_v35  ;;  %v317_v53 = vmul.f32 %v301_v49, %v301_v49  ;;  %v318_v54 = vmul.f32 %v302_v50, %v302_v50  ;;  %v293_v63 = vsub.f32 %v2791_v8, %v2913_v62  ;;  %v294_v3 = vsub.f32 %v2794_v9, %v2913_v62 }
  0xa9   : > { %v337_v55 = vadd.f32 %v318_v54, %v317_v53  ;;  %v309_v4 = vmul.f32 %v293_v63, %v293_v63  ;;  %v310_v6 = vmul.f32 %v294_v3, %v294_v3 }
  0xaa   : > { %557 = vperm.xlu1 %2431, %v522_v32   ;;  %v278_v26 = vpop.xlane.xlu2 %277 }
  0xab   : > { %v325_v11 = vadd.f32 %v310_v6, %v309_v4 }
  0xac   : > { %v272_v39 = vpop.xlane.xlu1 %271  ;;  %v266_v40 = vpop.xlane.xlu0 %265 }
  0xad   : > { %v2882_v41 = vmul.f32 0.00390625, %v266_v40  ;;  %v2920_v10 = vmul.f32 0.00390625, %v272_v39 }
  0xaf   : > { %v295_v44 = vsub.f32 %v2816_v17, %v2882_v41  ;;  %v296_v45 = vsub.f32 %v2819_v18, %v2882_v41  ;;  %569 = vperm.xlu2 %2433, %v522_v32   ;;  %v2923_v17 = vmul.f32 0.00390625, %v269_v37  ;;  %v299_v18 = vsub.f32 %v2810_v15, %v2920_v10 }
  0xb0   : > { %v300_v19 = vsub.f32 %v2813_v16, %v2920_v10  ;;  %v2939_v16 = vmul.f32 0.00390625, %v278_v26 }
  0xb1   : > { %v311_v46 = vmul.f32 %v295_v44, %v295_v44  ;;  %v312_v47 = vmul.f32 %v296_v45, %v296_v45  ;;  %v297_v9 = vsub.f32 %v2783_v5, %v2923_v17  ;;  %v298_v21 = vsub.f32 %v2788_v7, %v2923_v17 }
  0xb2   : > { %2434 = vset.pattern.permute.xlu1 %v2769_v1  ;;  %v303_v7 = vsub.f32 %v2801_v12, %v2939_v16  ;;  %v304_v38 = vsub.f32 %v2807_v14, %v2939_v16  ;;  %v2947_v44 = vpop.permute.xlu2 %484 }
  0xb3   : > { %v328_v48 = vadd.f32 %v312_v47, %v311_v46  ;;  %v313_v28 = vmul.f32 %v297_v9, %v297_v9  ;;  %v314_v29 = vmul.f32 %v298_v21, %v298_v21 }
  0xb4   : > { %v284_v51 = vpop.xlane.xlu1 %283  ;;  %v281_v20 = vpop.xlane.xlu0 %280  ;;  %v319_v39 = vmul.f32 %v303_v7, %v303_v7  ;;  %v320_v40 = vmul.f32 %v304_v38, %v304_v38 }
  0xb5   : > { %329 = vadd.xlane.f32.xlu0 %v328_v48  ;;  %v2895_v52 = vmul.f32 0.00390625, %v284_v51  ;;  %v2929_v8 = vmul.f32 0.00390625, %v281_v20  ;;  %v331_v37 = vadd.f32 %v314_v29, %v313_v28 }
  0xb7   : > { %2435 = vset.pattern.permute.xlu2 %v2772_v2  ;;  %v307_v56 = vsub.f32 %v2829_v22, %v2895_v52  ;;  %v308_v57 = vsub.f32 %v2832_v23, %v2895_v52  ;;  %v315_v22 = vmul.f32 %v299_v18, %v299_v18  ;;  %v316_v23 = vmul.f32 %v300_v19, %v300_v19  ;;  %v2471_v18 = vld [vmem:[%s3801_s2] ss:$0 sm:$0xff] }
  0xb8   : > { %v305_v27 = vsub.f32 %v2835_v24, %v2929_v8  ;;  %v306_v15 = vsub.f32 %v2838_v25, %v2929_v8  ;;  %v340_v25 = vadd.f32 %v320_v40, %v319_v39 }
  0xb9   : > { %v323_v58 = vmul.f32 %v307_v56, %v307_v56  ;;  %v324_v59 = vmul.f32 %v308_v57, %v308_v57  ;;  %v334_v32 = vadd.f32 %v316_v23, %v315_v22 }
  0xba   : > { %576 = vperm.xlu1 %2434, %v571_v36   ;;  %v322_v5 = vmul.f32 %v306_v15, %v306_v15  ;;  %v2952_v46 = vpop.permute.xlu2 %496 }
  0xbb   : > { %v346_v60 = vadd.f32 %v324_v59, %v323_v58 }
  0xbd   : > { %338 = vadd.xlane.f32.xlu0 %v337_v55 }
  0xbf   : > { %582 = vperm.xlu2 %2435, %v571_v36  }
  0xc2   : > { %2436 = vset.pattern.permute.xlu1 %v2804_v13 }
  0xc5   : > { %347 = vadd.xlane.f32.xlu0 %v346_v60  ;;  %v2988_v60 = vld [vmem:[%s3802_s3] sm:$0xff] }
  0xc6   : > { %v967_v3 = vperm.slane %v2988_v60, 0  ;;  %v988_v9 = vperm.slane %v2988_v60, 3  ;;  %v974_v26 = vperm.slane %v2988_v60, 1 }
  0xc7   : > { %2438 = vset.pattern.permute.xlu2 %v2856_v31  ;;  %v2945_v42 = vpop.permute.xlu0 %490 }
  0xc9   : > { %v2958_v14 = vpop.permute.xlu2 %508 }
  0xca   : > { %588 = vperm.xlu1 %2436, %v571_v36  }
  0xcc   : > { %v2955_v12 = vpop.permute.xlu1 %478 }
  0xcf   : > { %600 = vperm.xlu2 %2438, %v571_v36  }
  0xd2   : > { %2439 = vset.pattern.permute.xlu1 %v2861_v33 }
  0xd7   : > { %2440 = vset.pattern.permute.xlu2 %v2865_v34  ;;  %v2950_v45 = vpop.permute.xlu0 %533 }
  0xd9   : > { %655 = vperm.xlu0 %2446, %v2909_v61   ;;  %v2966_v49 = vpop.permute.xlu2 %520 }
  0xda   : > { %606 = vperm.xlu1 %2439, %v571_v36  }
  0xdc   : > { %v2963_v48 = vpop.permute.xlu1 %502 }
  0xdf   : > { %612 = vperm.xlu2 %2440, %v571_v36  }
  0xe1   : > { %2447 = vset.pattern.permute.xlu0 %v2769_v1 }
  0xe2   : > { %2441 = vset.pattern.permute.xlu1 %v2870_v35 }
  0xe7   : > { %2442 = vset.pattern.permute.xlu2 %v2772_v2  ;;  %v2960_v47 = vpop.permute.xlu0 %563 }
  0xe9   : > { %625 = vperm.xlu0 %2447, %v2909_v61   ;;  %v2974_v53 = vpop.permute.xlu2 %539 }
  0xea   : > { %618 = vperm.xlu1 %2441, %v571_v36   ;;  %v321_v36 = vmul.f32 %v305_v27, %v305_v27 }
  0xec   : > { %v343_v24 = vadd.f32 %v322_v5, %v321_v36  ;;  %v2971_v51 = vpop.permute.xlu1 %514  ;;  %v981_v5 = vperm.slane %v2988_v60, 2 }
  0xf1   : > { %972 = vperm.xlu0 %2447, %v967_v3  }
  0xf2   : > { %2443 = vset.pattern.permute.xlu1 %v2804_v13 }
  0xf7   : > { %v2969_v50 = vpop.permute.xlu0 %594 }
  0xf9   : > { %v2980_v56 = vpop.permute.xlu2 %551  ;;  %993 = vperm.xlu0 %2447, %v988_v9  }
  0xfc   : > { %v2977_v54 = vpop.permute.xlu1 %527 }
 0x108   : > { %326 = vadd.xlane.f32.xlu2 %v325_v11  ;;  %v3805_v11 = vmov 0  }
 0x109   : > { %v2990_v63 = vpop.permute.xlu2 %569  ;;  %2453 = vset.pattern.permute.xlu0 %v3805_v11 }
 0x10c   : > { %v2983_v58 = vpop.permute.xlu1 %545 }
 0x110   : > { %335 = vadd.xlane.f32.xlu2 %v334_v32 }
 0x114   : > { %332 = vadd.xlane.f32.xlu1 %v331_v37 }
 0x118   : > { %344 = vadd.xlane.f32.xlu2 %v343_v24 }
 0x119   : > { %v3003_v20 = vpop.permute.xlu2 %582 }
 0x11c   : > { %341 = vadd.xlane.f32.xlu1 %v340_v25 }
 0x128   : > { %v330_v55 = vpop.xlane.xlu0 %329 }
 0x129   : > { %v350_v57 = vmul.f32 0.00390625, %v330_v55  ;;  %v3010_v28 = vpop.permute.xlu2 %600 }
 0x12b   : > { %2473 = vrsqrt.f32 %v350_v57  ;;  %vm376_vm0 = vcmp.eq.f32.partialorder %v350_v57, inf  ;;  %v379_v3 = vand.u32 2147483648, %v350_v57  ;;  %vm378_vm1 = vcmp.eq.f32.partialorder %v350_v57, 0.0 }
 0x130   : > { %631 = vperm.xlu2 %2442, %v2909_v61   ;;  %v339_v59 = vpop.xlane.xlu0 %338 }
 0x131   : > { %v2993_v4 = vmul.f32 0.00390625, %v339_v59  ;;  %v2474_v6 = vpop.eup %2473  ;;  %v995_v59 = vperm.slane %v2988_v60, 4 }
 0x132   : > { %v370_v19 = vmul.f32 %v2474_v6, %v350_v57 }
 0x133   : > { %2475 = vrsqrt.f32 %v2993_v4  ;;  %vm412_vm2 = vcmp.eq.f32.partialorder %v2993_v4, inf  ;;  %vm414_vm3 = vcmp.eq.f32.partialorder %v2993_v4, 0.0 }
 0x134   : > { %v371_v21 = vmul.f32 %v2474_v6, %v370_v19 }
 0x135   : > { %637 = vperm.xlu1 %2443, %v2909_v61  }
 0x136   : > { %v372_v15 = vmul.f32 0.5, %v371_v21 }
 0x138   : > { %2444 = vset.pattern.permute.xlu2 %v2851_v30  ;;  %v373_v29 = vsub.f32 1.5, %v372_v15  ;;  %v348_v24 = vpop.xlane.xlu0 %347 }
 0x139   : > { %v2476_v22 = vpop.eup %2475  ;;  %v3016_v38 = vpop.permute.xlu2 %612  ;;  %v3020_v55 = vmul.f32 0.00390625, %v348_v24 }
 0x13a   : > { %v406_v27 = vmul.f32 %v2476_v22, %v2993_v4  ;;  %v374_v37 = vmul.f32 %v2474_v6, %v373_v29 }
 0x13b   : > { %2477 = vrsqrt.f32 %v3020_v55  ;;  %vm448_vm9 = vcmp.eq.f32.partialorder %v3020_v55, inf  ;;  %vm450_vm13 = vcmp.eq.f32.partialorder %v3020_v55, 0.0 }
 0x13c   : > { %v407_v32 = vmul.f32 %v2476_v22, %v406_v27  ;;  %v375_v39 = vmul.f32 %v374_v37, %v350_v57 }
 0x13d   : > { %2445 = vset.pattern.permute.xlu1 %v2856_v31 }
 0x13e   : > { %v408_v7 = vmul.f32 0.5, %v407_v32 }
 0x140   : > { %643 = vperm.xlu2 %2444, %v2909_v61   ;;  %v409_v40 = vsub.f32 1.5, %v408_v7 }
 0x141   : > { %v2478_v29 = vpop.eup %2477 }
 0x142   : > { %v410_v19 = vmul.f32 %v2476_v22, %v409_v40  ;;  %v415_v22 = vand.u32 2147483648, %v2993_v4  ;;  %v442_v7 = vmul.f32 %v2478_v29, %v3020_v55 }
 0x145   : > { %649 = vperm.xlu1 %2445, %v2909_v61  }
 0x148   : > { %2448 = vset.pattern.permute.xlu2 %v2865_v34 }
 0x14d   : > { %2449 = vset.pattern.permute.xlu1 %v2870_v35 }
 0x150   : > { %661 = vperm.xlu2 %2448, %v2909_v61  }
 0x155   : > { %667 = vperm.xlu1 %2449, %v2909_v61   ;;  %v2996_v61 = vpop.permute.xlu1 %557 }
 0x158   : > { %2451 = vset.pattern.permute.xlu2 %v3805_v11 }
 0x15d   : > { %2450 = vset.pattern.permute.xlu1 %v2769_v1  ;;  %v3006_v23 = vpop.permute.xlu1 %576 }
 0x165   : > { %954 = vperm.xlu1 %2450, %v2471_v18   ;;  %v3013_v36 = vpop.permute.xlu1 %588  ;;  %v377_v18 = vsel %vm376_vm0, %v350_v57, %v375_v39  ;;  %vm866_vm0 = vcmask 130112  }
 0x166   : > { %v380_v21 = vsel %vm378_vm1, %v379_v3, %v377_v18  ;;  %vm870_vm1 = vcmask 195712  }
 0x167   : > { %v3028_v15 = vadd.f32 %v380_v21, %v2882_v41 }
 0x16d   : > { %979 = vperm.xlu1 %2450, %v974_v26   ;;  %v3018_v25 = vpop.permute.xlu1 %606  ;;  %v411_v26 = vmul.f32 %v410_v19, %v2993_v4 }
 0x16f   : > { %v413_v57 = vsel %vm412_vm2, %v2993_v4, %v411_v26  ;;  %vm874_vm2 = vcmask 261312  }
 0x170   : > { %v416_v24 = vsel %vm414_vm3, %v415_v22, %v413_v57  ;;  %vm878_vm3 = vcmask 326912  }
 0x171   : > { %v3041_v3 = vadd.f32 %v416_v24, %v2884_v43 }
 0x175   : > { %986 = vperm.xlu1 %2450, %v981_v5   ;;  %v3025_v27 = vpop.permute.xlu1 %618  ;;  %v702_v5 = vmul.f32 %v2947_v44, %v3028_v15  ;;  %v443_v44 = vmul.f32 %v2478_v29, %v442_v7 }
 0x177   : > { %v444_v57 = vmul.f32 0.5, %v443_v44 }
 0x17b   : > { %v327_v6 = vpop.xlane.xlu2 %326 }
 0x17c   : > { %v349_v9 = vmul.f32 0.00390625, %v327_v6  ;;  %v705_v6 = vmul.f32 %v2963_v48, %v3041_v3 }
 0x17d   : > { %1000 = vperm.xlu1 %2450, %v995_v59  }
 0x17e   : > { %2479 = vrsqrt.f32 %v349_v9  ;;  %vm364_vm4 = vcmp.eq.f32.partialorder %v349_v9, inf  ;;  %v367_v48 = vand.u32 2147483648, %v349_v9  ;;  %vm366_vm5 = vcmp.eq.f32.partialorder %v349_v9, 0.0 }
 0x183   : > { %v336_v32 = vpop.xlane.xlu2 %335 }
 0x184   : > { %v2480_v37 = vpop.eup %2479  ;;  %v352_v41 = vmul.f32 0.00390625, %v336_v32 }
 0x185   : > { %2452 = vset.pattern.permute.xlu1 %v3805_v11  ;;  %v358_v39 = vmul.f32 %v2480_v37, %v349_v9 }
 0x186   : > { %769 = vperm.xlu1 %2452, %v702_v5   ;;  %2481 = vrsqrt.f32 %v352_v41  ;;  %vm400_vm6 = vcmp.eq.f32.partialorder %v352_v41, inf  ;;  %vm402_vm7 = vcmp.eq.f32.partialorder %v352_v41, 0.0 }
 0x187   : > { %v333_v40 = vpop.xlane.xlu1 %332  ;;  %v359_v18 = vmul.f32 %v2480_v37, %v358_v39 }
 0x188   : > { %v3038_v59 = vmul.f32 0.00390625, %v333_v40 }
 0x189   : > { %v360_v4 = vmul.f32 0.5, %v359_v18  ;;  %v445_v18 = vsub.f32 1.5, %v444_v57 }
 0x18a   : > { %2483 = vrsqrt.f32 %v3038_v59  ;;  %vm388_vm8 = vcmp.eq.f32.partialorder %v3038_v59, inf  ;;  %vm390_vm10 = vcmp.eq.f32.partialorder %v3038_v59, 0.0 }
 0x18b   : > { %v345_v19 = vpop.xlane.xlu2 %344  ;;  %v361_v21 = vsub.f32 1.5, %v360_v4 }
 0x18c   : > { %v2482_v26 = vpop.eup %2481  ;;  %v3046_v22 = vmul.f32 0.00390625, %v345_v19 }
 0x18d   : > { %v362_v32 = vmul.f32 %v2480_v37, %v361_v21  ;;  %v394_v5 = vmul.f32 %v2482_v26, %v352_v41 }
 0x18e   : > { %778 = vperm.xlu1 %2452, %v705_v6   ;;  %2485 = vrsqrt.f32 %v3046_v22  ;;  %vm436_vm11 = vcmp.eq.f32.partialorder %v3046_v22, inf  ;;  %vm438_vm12 = vcmp.eq.f32.partialorder %v3046_v22, 0.0 }
 0x18f   : > { %v342_v43 = vpop.xlane.xlu1 %341  ;;  %v363_v39 = vmul.f32 %v362_v32, %v349_v9  ;;  %v395_v40 = vmul.f32 %v2482_v26, %v394_v5  ;;  %v446_v32 = vmul.f32 %v2478_v29, %v445_v18 }
 0x190   : > { %v2484_v24 = vpop.eup %2483  ;;  %v3049_v7 = vmul.f32 0.00390625, %v342_v43 }
 0x191   : > { %v382_v11 = vmul.f32 %v2484_v24, %v3038_v59  ;;  %v365_v44 = vsel %vm364_vm4, %v349_v9, %v363_v39  ;;  %v396_v4 = vmul.f32 0.5, %v395_v40  ;;  %vm882_vm4 = vcmask 392512  }
 0x192   : > { %2487 = vrsqrt.f32 %v3049_v7  ;;  %v368_v37 = vsel %vm366_vm5, %v367_v48, %v365_v44  ;;  %v447_v48 = vmul.f32 %v446_v32, %v3020_v55  ;;  %v439_v32 = vand.u32 2147483648, %v3046_v22 }
 0x193   : > { %v383_v19 = vmul.f32 %v2484_v24, %v382_v11  ;;  %v3054_v6 = vadd.f32 %v368_v37, %v2913_v62  ;;  %v397_v21 = vsub.f32 1.5, %v396_v4  ;;  %v403_v62 = vand.u32 2147483648, %v352_v41 }
 0x194   : > { %v2486_v43 = vpop.eup %2485  ;;  %vm424_vm14 = vcmp.eq.f32.partialorder %v3049_v7, inf  ;;  %vm426_vm15 = vcmp.eq.f32.partialorder %v3049_v7, 0.0  ;;  %vm886_vm5 = vcmask 458112  }
 0x195   : > { %v384_v0 = vmul.f32 0.5, %v383_v19  ;;  %v430_v57 = vmul.f32 %v2486_v43, %v3046_v22  ;;  %v701_v5 = vmul.f32 %v2955_v12, %v3054_v6  ;;  %v398_v34 = vmul.f32 %v2482_v26, %v397_v21 }
 0x197   : > { %v385_v31 = vsub.f32 1.5, %v384_v0  ;;  %766 = vperm.xlu2 %2451, %v701_v5   ;;  %v399_v9 = vmul.f32 %v398_v34, %v352_v41  ;;  %v431_v39 = vmul.f32 %v2486_v43, %v430_v57  ;;  %v391_v34 = vand.u32 2147483648, %v3038_v59 }
 0x198   : > { %v2488_v33 = vpop.eup %2487  ;;  %v451_v5 = vand.u32 2147483648, %v3020_v55 }
 0x199   : > { %v418_v11 = vmul.f32 %v2488_v33, %v3049_v7  ;;  %v386_v40 = vmul.f32 %v2484_v24, %v385_v31  ;;  %v401_v44 = vsel %vm400_vm6, %v352_v41, %v399_v9  ;;  %v432_v29 = vmul.f32 0.5, %v431_v39 }
 0x19a   : > { %v404_v18 = vsel %vm402_vm7, %v403_v62, %v401_v44  ;;  %v449_v24 = vsel %vm448_vm9, %v3020_v55, %v447_v48  ;;  %vm890_vm6 = vcmask 523712   ;;  %vm937_vm7 = vcmask 1041409  }
 0x19b   : > { %v387_v4 = vmul.f32 %v386_v40, %v3038_v59  ;;  %v419_v12 = vmul.f32 %v2488_v33, %v418_v11  ;;  %v3063_v0 = vadd.f32 %v404_v18, %v2920_v10  ;;  %v433_v26 = vsub.f32 1.5, %v432_v29  ;;  %v632_v29 = vpop.permute.xlu2 %631 }
 0x19c   : > { %v427_v40 = vand.u32 2147483648, %v3049_v7  ;;  %v721_v18 = vmul.f32 %v3010_v28, %v3041_v3  ;;  %vm941_vm9 = vcmask 1043459  }
 0x19d   : > { %v389_v31 = vsel %vm388_vm8, %v3038_v59, %v387_v4  ;;  %v420_v41 = vmul.f32 0.5, %v419_v12  ;;  %v704_v37 = vmul.f32 %v2952_v46, %v3063_v0  ;;  %v434_v10 = vmul.f32 %v2486_v43, %v433_v26 }
 0x19e   : > { %v392_v19 = vsel %vm390_vm10, %v391_v34, %v389_v31  ;;  %vm939_vm8 = vcmask 1042434   ;;  %vm944_vm10 = vcmask 519168  }
 0x19f   : > { %v3074_v21 = vadd.f32 %v392_v19, %v2923_v17  ;;  %v421_v57 = vsub.f32 1.5, %v420_v41  ;;  %775 = vperm.xlu2 %2451, %v704_v37   ;;  %v435_v59 = vmul.f32 %v434_v10, %v3046_v22  ;;  %v452_v17 = vsel %vm450_vm13, %v451_v5, %v449_v24  ;;  %v464_v37 = vld [vmem:[%s3802_s3 + $0x8] sm:$0xff] }
 0x1a0   : > { %v3092_v55 = vadd.f32 %v452_v17, %v2895_v52  ;;  %v710_v52 = vmul.f32 %v2950_v45, %v3028_v15  ;;  %v1002_v19 = vperm.slane %v2988_v60, 5  ;;  %v1030_v10 = vperm.slane %v464_v37, 1 }
 0x1a1   : > { %v703_v46 = vmul.f32 %v2945_v42, %v3074_v21  ;;  %v422_v43 = vmul.f32 %v2488_v33, %v421_v57  ;;  %v437_v9 = vsel %vm436_vm11, %v3046_v22, %v435_v59  ;;  %v1016_v5 = vperm.slane %v2988_v60, 7 }
 0x1a2   : > { %v440_v39 = vsel %vm438_vm12, %v439_v32, %v437_v9  ;;  %v708_v44 = vmul.f32 %v2966_v49, %v3092_v55  ;;  %v716_v45 = vmul.f32 %v2990_v63, %v3092_v55  ;;  %v720_v63 = vmul.f32 %v2969_v50, %v3063_v0  ;;  %v465_v32 = vld [vmem:[%s3802_s3 + $0x10] sm:$0xff] }
 0x1a3   : > { %772 = vperm.xlu0 %2453, %v703_v46   ;;  %v423_v11 = vmul.f32 %v422_v43, %v3049_v7  ;;  %v3087_v62 = vadd.f32 %v440_v39, %v2929_v8  ;;  %v724_v50 = vmul.f32 %v3025_v27, %v3092_v55  ;;  %v644_v34 = vpop.permute.xlu2 %643  ;;  %v1079_v59 = vperm.slane %v465_v32, 0 }
 0x1a4   : > { %v728_v28 = vmul.f32 %v644_v34, %v3063_v0  ;;  %v1044_v46 = vperm.slane %v464_v37, 3  ;;  %v1037_v17 = vperm.slane %v464_v37, 2  ;;  %v1100_v9 = vperm.slane %v465_v32, 3 }
 0x1a5   : > { %v425_v42 = vsel %vm424_vm14, %v3049_v7, %v423_v11  ;;  %v707_v33 = vmul.f32 %v2971_v51, %v3087_v62  ;;  %v709_v7 = vmul.f32 %v2977_v54, %v3054_v6  ;;  %v711_v51 = vmul.f32 %v2974_v53, %v3074_v21 }
 0x1a6   : > { %v428_v22 = vsel %vm426_vm15, %v427_v40, %v425_v42  ;;  %v715_v53 = vmul.f32 %v2960_v47, %v3087_v62  ;;  %v717_v54 = vmul.f32 %v3006_v23, %v3054_v6  ;;  %v1058_v11 = vperm.slane %v464_v37, 5 }
 0x1a7   : > { %v458_v48 = vadd.f32 %v428_v22, %v2939_v16  ;;  %784 = vperm.xlu1 %2452, %v707_v33   ;;  %v713_v16 = vmul.f32 %v2980_v56, %v3041_v3  ;;  %v719_v56 = vmul.f32 %v3013_v36, %v3074_v21  ;;  %v638_v23 = vpop.permute.xlu1 %637  ;;  %v723_v36 = vmul.f32 %v3016_v38, %v3087_v62  ;;  %v466_v22 = vld [vmem:[%s3802_s3 + $0x18] sm:$0xff] }
 0x1a8   : > { %v727_v38 = vmul.f32 %v638_v23, %v3074_v21  ;;  %v1023_v21 = vperm.slane %v464_v37, 0  ;;  %v1051_v40 = vperm.slane %v464_v37, 4  ;;  %v1072_v33 = vperm.slane %v464_v37, 7 }
 0x1a9   : > { %v706_v8 = vmul.f32 %v2958_v14, %v458_v48  ;;  %v712_v14 = vmul.f32 %v2983_v58, %v3063_v0  ;;  %v714_v49 = vmul.f32 %v2996_v61, %v458_v48  ;;  %v656_v58 = vpop.permute.xlu0 %655  ;;  %v718_v61 = vmul.f32 %v3003_v20, %v3028_v15 }
 0x1aa   : > { %v722_v47 = vmul.f32 %v3018_v25, %v458_v48  ;;  %v726_v25 = vmul.f32 %v632_v29, %v3028_v15  ;;  %v730_v24 = vmul.f32 %v656_v58, %v458_v48  ;;  %v1184_v58 = vperm.slane %v466_v22, 7 }
 0x1ab   : > { %781 = vperm.xlu2 %2451, %v706_v8   ;;  %787 = vperm.xlu0 %2453, %v708_v44   ;;  %v662_v41 = vpop.permute.xlu2 %661  ;;  %v1065_v8 = vperm.slane %v464_v37, 6  ;;  %v1142_v44 = vperm.slane %v466_v22, 1  ;;  %v1128_v23 = vperm.slane %v465_v32, 7  ;;  %vm1866_vm11 = vcmask 1044484  }
 0x1ac   : > { %vm1868_vm12 = vcmask 1045509   ;;  %vm1870_vm13 = vcmask 1046534   ;;  %vm1872_vm14 = vcmask 1047559   ;;  %vm1931_vm15 = vcmask 31744  }
 0x1af   : > { %793 = vperm.xlu1 %2452, %v710_v52  }
 0x1b1   : > { %v626_v4 = vpop.permute.xlu0 %625 }
 0x1b2   : > { %v725_v20 = vmul.f32 %v626_v4, %v3054_v6  ;;  %v731_v6 = vmul.f32 %v662_v41, %v3087_v62 }
 0x1b3   : > { %790 = vperm.xlu2 %2451, %v709_v7   ;;  %796 = vperm.xlu0 %2453, %v711_v51   ;;  %v1093_v51 = vperm.slane %v465_v32, 2 }
 0x1b7   : > { %802 = vperm.xlu1 %2452, %v713_v16   ;;  %v650_v12 = vpop.permute.xlu1 %649 }
 0x1b8   : > { %v729_v26 = vmul.f32 %v650_v12, %v3041_v3  ;;  %v1009_v3 = vperm.slane %v2988_v60, 6 }
 0x1b9   : > { %v3159_v39 = vpop.permute.xlu0 %972 }
 0x1bb   : > { %799 = vperm.xlu2 %2451, %v712_v14   ;;  %805 = vperm.xlu0 %2453, %v714_v49   ;;  %v1086_v14 = vperm.slane %v465_v32, 1  ;;  %v1163_v49 = vperm.slane %v466_v22, 4 }
 0x1bf   : > { %811 = vperm.xlu1 %2452, %v716_v45  }
 0x1c1   : > { %v3165_v42 = vpop.permute.xlu0 %993 }
 0x1c3   : > { %808 = vperm.xlu2 %2451, %v715_v53   ;;  %814 = vperm.xlu0 %2453, %v717_v54   ;;  %v1114_v53 = vperm.slane %v465_v32, 5 }
 0x1c7   : > { %820 = vperm.xlu1 %2452, %v719_v56   ;;  %v668_v31 = vpop.permute.xlu1 %667  ;;  %v1107_v56 = vperm.slane %v465_v32, 4 }
 0x1c8   : > { %v732_v27 = vmul.f32 %v668_v31, %v3092_v55  ;;  %v1121_v55 = vperm.slane %v465_v32, 6  ;;  %v1170_v31 = vperm.slane %v466_v22, 5 }
 0x1cb   : > { %817 = vperm.xlu2 %2451, %v718_v61   ;;  %823 = vperm.xlu0 %2453, %v720_v63   ;;  %v1135_v63 = vperm.slane %v466_v22, 0 }
 0x1cf   : > { %829 = vperm.xlu1 %2452, %v722_v47   ;;  %v467_v47 = vld [vmem:[%s3802_s3 + $0x20] sm:$0xff] }
 0x1d0   : > { %v1226_v12 = vperm.slane %v467_v47, 5  ;;  %v1191_v37 = vperm.slane %v467_v47, 0 }
 0x1d3   : > { %826 = vperm.xlu2 %2451, %v721_v18   ;;  %832 = vperm.xlu0 %2453, %v723_v36   ;;  %v1205_v18 = vperm.slane %v467_v47, 2 }
 0x1d7   : > { %838 = vperm.xlu1 %2452, %v725_v20   ;;  %v3139_v15 = vpop.permute.xlu1 %954  ;;  %v1156_v20 = vperm.slane %v466_v22, 3 }
 0x1db   : > { %835 = vperm.xlu2 %2451, %v724_v50   ;;  %841 = vperm.xlu0 %2453, %v726_v25   ;;  %v1149_v25 = vperm.slane %v466_v22, 2 }
 0x1df   : > { %847 = vperm.xlu1 %2452, %v728_v28   ;;  %v3142_v0 = vpop.permute.xlu1 %979  ;;  %v1177_v28 = vperm.slane %v466_v22, 6 }
 0x1e3   : > { %844 = vperm.xlu2 %2451, %v727_v38   ;;  %850 = vperm.xlu0 %2453, %v729_v26   ;;  %v3200_v38 = vld [vmem:[%s3802_s3 + $0x28] sm:$0xff] }
 0x1e4   : > { %v1247_v41 = vperm.slane %v3200_v38, 0 }
 0x1e7   : > { %856 = vperm.xlu1 %2452, %v731_v6   ;;  %v3154_v57 = vpop.permute.xlu1 %986 }
 0x1eb   : > { %859 = vperm.xlu0 %2453, %v732_v27   ;;  %853 = vperm.xlu2 %2451, %v730_v24   ;;  %v1198_v24 = vperm.slane %v467_v47, 1 }
 0x1ef   : > { %2455 = vset.pattern.permute.xlu1 %v2769_v1  ;;  %v3157_v43 = vpop.permute.xlu1 %1000 }
 0x1f1   : > { %v3161_v62 = vpop.permute.xlu2 %766 }
 0x1f3   : > { %2454 = vset.pattern.permute.xlu0 %v2769_v1  ;;  %2456 = vset.pattern.permute.xlu2 %v2769_v1 }
 0x1f7   : > { %1014 = vperm.xlu1 %2455, %v1009_v3  }
 0x1f8   : > { %v3163_v60 = vpop.permute.xlu1 %769 }
 0x1f9   : > { %v3170_v48 = vpop.permute.xlu2 %775 }
 0x1fb   : > { %1007 = vperm.xlu0 %2454, %v1002_v19   ;;  %1035 = vperm.xlu2 %2456, %v1030_v10   ;;  %v1268_v19 = vperm.slane %v3200_v38, 3 }
 0x1ff   : > { %1028 = vperm.xlu1 %2455, %v1023_v21   ;;  %v1219_v21 = vperm.slane %v467_v47, 4 }
 0x200   : > { %v3172_v52 = vpop.permute.xlu1 %778 }
 0x203   : > { %1021 = vperm.xlu0 %2454, %v1016_v5   ;;  %1084 = vperm.xlu2 %2456, %v1079_v59   ;;  %v1212_v5 = vperm.slane %v467_v47, 3  ;;  %v1289_v59 = vperm.slane %v3200_v38, 6 }
 0x205   : > { %v3176_v16 = vpop.permute.xlu2 %781 }
 0x207   : > { %1049 = vperm.xlu1 %2455, %v1044_v46  }
 0x20b   : > { %1042 = vperm.xlu0 %2454, %v1037_v17   ;;  %1105 = vperm.xlu2 %2456, %v1100_v9   ;;  %v1240_v17 = vperm.slane %v467_v47, 7  ;;  %v3222_v9 = vld [vmem:[%s3802_s3 + $0x30] sm:$0xff] }
 0x20d   : > { %v3182_v61 = vpop.permute.xlu2 %790 }
 0x20f   : > { %1063 = vperm.xlu1 %2455, %v1058_v11  }
 0x213   : > { %1056 = vperm.xlu0 %2454, %v1051_v40   ;;  %1126 = vperm.xlu2 %2456, %v1121_v55   ;;  %v1233_v40 = vperm.slane %v467_v47, 6  ;;  %v1310_v55 = vperm.slane %v3222_v9, 1 }
 0x215   : > { %v3174_v7 = vpop.permute.xlu0 %772  ;;  %v3191_v4 = vpop.permute.xlu2 %799 }
 0x217   : > { %1077 = vperm.xlu1 %2455, %v1072_v33  }
 0x219   : > { %v3178_v45 = vpop.permute.xlu1 %784 }
 0x21b   : > { %1070 = vperm.xlu0 %2454, %v1065_v8   ;;  %1147 = vperm.xlu2 %2456, %v1142_v44   ;;  %v1261_v8 = vperm.slane %v3200_v38, 2 }
 0x21d   : > { %v3180_v54 = vpop.permute.xlu0 %787  ;;  %v3202_v26 = vpop.permute.xlu2 %808 }
 0x21f   : > { %1098 = vperm.xlu1 %2455, %v1093_v51   ;;  %v1254_v51 = vperm.slane %v3200_v38, 1 }
 0x221   : > { %v3187_v29 = vpop.permute.xlu1 %793 }
 0x223   : > { %1091 = vperm.xlu0 %2454, %v1086_v14   ;;  %1168 = vperm.xlu2 %2456, %v1163_v49   ;;  %v3819_v49 = vlaneseq }
 0x225   : > { %v3189_v36 = vpop.permute.xlu0 %796  ;;  %v3209_v3 = vpop.permute.xlu2 %817 }
 0x227   : > { %1119 = vperm.xlu1 %2455, %v1114_v53   ;;  %v3234_v53 = vand.u32 127, %v3819_v49 }
 0x229   : > { %v3193_v50 = vpop.permute.xlu1 %802  ;;  %v868_v47 = vadd.s32 4294967280, %v3234_v53 }
 0x22b   : > { %1112 = vperm.xlu0 %2454, %v1107_v56   ;;  %1189 = vperm.xlu2 %2456, %v1184_v58   ;;  %v1282_v56 = vperm.slane %v3200_v38, 5  ;;  %v864_v58 = vadd.s32 4294967288, %v3234_v53 }
 0x22d   : > { %v3195_v34 = vpop.permute.xlu0 %805  ;;  %v3217_v46 = vpop.permute.xlu2 %826 }
 0x22f   : > { %1140 = vperm.xlu1 %2455, %v1135_v63  }
 0x231   : > { %v3205_v6 = vpop.permute.xlu1 %811 }
 0x233   : > { %1133 = vperm.xlu0 %2454, %v1128_v23   ;;  %1210 = vperm.xlu2 %2456, %v1205_v18   ;;  %v1275_v23 = vperm.slane %v3200_v38, 4  ;;  %v865_v18 = vperm.slane %v3163_v60, %v864_v58  ;;  %v892_v60 = vperm.slane %v3182_v61, %v3234_v53 }
 0x235   : > { %v3207_v27 = vpop.permute.xlu0 %814  ;;  %v3229_v22 = vpop.permute.xlu2 %835 }
 0x237   : > { %1161 = vperm.xlu1 %2455, %v1156_v20   ;;  %v872_v20 = vadd.s32 4294967272, %v3234_v53 }
 0x239   : > { %v3212_v10 = vpop.permute.xlu1 %820 }
 0x23b   : > { %1154 = vperm.xlu0 %2454, %v1149_v25   ;;  %1231 = vperm.xlu2 %2456, %v1226_v12   ;;  %v876_v25 = vadd.s32 4294967264, %v3234_v53  ;;  %v893_v12 = vperm.slane %v3187_v29, %v864_v58  ;;  %v908_v29 = vperm.slane %v3209_v3, %v864_v58 }
 0x23d   : > { %v3214_v32 = vpop.permute.xlu0 %823  ;;  %v845_v63 = vpop.permute.xlu2 %844 }
 0x23e   : > { %v912_v3 = vperm.slane %v3214_v32, %v872_v20 }
 0x23f   : > { %1182 = vperm.xlu1 %2455, %v1177_v28  }
 0x241   : > { %v3224_v11 = vpop.permute.xlu1 %829 }
 0x243   : > { %1175 = vperm.xlu0 %2454, %v1170_v31   ;;  %1252 = vperm.xlu2 %2456, %v1247_v41   ;;  %v863_v31 = vperm.slane %v3161_v62, %v3234_v53  ;;  %v3247_v41 = vadd.s32 4294967256, %v3234_v53  ;;  %v895_v62 = vperm.slane %v3189_v36, %v868_v47 }
 0x245   : > { %v3227_v33 = vpop.permute.xlu0 %832 }
 0x247   : > { %1203 = vperm.xlu1 %2455, %v1198_v24   ;;  %v869_v24 = vperm.slane %v3174_v7, %v868_v47  ;;  %v867_v7 = vsel %vm866_vm0, %v865_v18, %v863_v31 }
 0x249   : > { %v839_v44 = vpop.permute.xlu1 %838 }
 0x24a   : > { %v922_v61 = vperm.slane %v839_v44, %v3234_v53  ;;  %v899_v44 = vperm.slane %v3193_v50, %v876_v25 }
 0x24b   : > { %1196 = vperm.xlu0 %2454, %v1191_v37   ;;  %1273 = vperm.xlu2 %2456, %v1268_v19   ;;  %v907_v37 = vperm.slane %v3207_v27, %v3234_v53  ;;  %v910_v19 = vperm.slane %v3212_v10, %v868_v47  ;;  %v894_v27 = vsel %vm866_vm0, %v893_v12, %v892_v60 }
 0x24c   : > { %v871_v10 = vsel %vm870_vm1, %v869_v24, %v867_v7  ;;  %v896_v49 = vsel %vm870_vm1, %v895_v62, %v894_v27  ;;  %v881_v24 = vperm.slane %v3176_v16, %v3247_v41  ;;  %v1317_v7 = vperm.slane %v3222_v9, 2 }
 0x24d   : > { %v842_v14 = vpop.permute.xlu0 %841 }
 0x24f   : > { %1224 = vperm.xlu1 %2455, %v1219_v21   ;;  %v923_v21 = vperm.slane %v842_v14, %v864_v58  ;;  %v1296_v14 = vperm.slane %v3200_v38, 7  ;;  %v897_v58 = vperm.slane %v3191_v4, %v872_v20  ;;  %v916_v38 = vperm.slane %v3224_v11, %v3247_v41 }
 0x250   : > { %v1324_v11 = vperm.slane %v3222_v9, 3 }
 0x251   : > { %v848_v28 = vpop.permute.xlu1 %847  ;;  %v898_v50 = vsel %vm874_vm2, %v897_v58, %v896_v49 }
 0x252   : > { %v900_v31 = vsel %vm878_vm3, %v899_v44, %v898_v50 }
 0x253   : > { %1217 = vperm.xlu0 %2454, %v1212_v5   ;;  %1294 = vperm.xlu2 %2456, %v1289_v59   ;;  %v1303_v59 = vperm.slane %v3222_v9, 0 }
 0x255   : > { %v851_v5 = vpop.permute.xlu0 %850 }
 0x257   : > { %1245 = vperm.xlu1 %2455, %v1240_v17   ;;  %v873_v17 = vperm.slane %v3170_v48, %v872_v20  ;;  %v925_v48 = vperm.slane %v845_v63, %v868_v47  ;;  %v914_v63 = vperm.slane %v3217_v46, %v876_v25 }
 0x259   : > { %v875_v32 = vsel %vm874_vm2, %v873_v17, %v871_v10  ;;  %v857_v47 = vpop.permute.xlu1 %856 }
 0x25b   : > { %1238 = vperm.xlu0 %2454, %v1233_v40   ;;  %1315 = vperm.xlu2 %2456, %v1310_v55   ;;  %v909_v40 = vsel %vm866_vm0, %v908_v29, %v907_v37  ;;  %v854_v55 = vpop.permute.xlu2 %853 }
 0x25c   : > { %v911_v36 = vsel %vm870_vm1, %v910_v19, %v909_v40  ;;  %v931_v16 = vperm.slane %v854_v55, %v3247_v41 }
 0x25d   : > { %v913_v18 = vsel %vm874_vm2, %v912_v3, %v911_v36  ;;  %v860_v29 = vpop.permute.xlu0 %859 }
 0x25e   : > { %v915_v46 = vsel %vm878_vm3, %v914_v63, %v913_v18  ;;  %v1331_v63 = vperm.slane %v3222_v9, 4 }
 0x25f   : > { %1266 = vperm.xlu1 %2455, %v1261_v8   ;;  %v924_v8 = vsel %vm866_vm0, %v923_v21, %v922_v61  ;;  %v917_v60 = vsel %vm882_vm4, %v916_v38, %v915_v46 }
 0x260   : > { %v926_v12 = vsel %vm870_vm1, %v925_v48, %v924_v8  ;;  %v470_v48 = vld [vmem:[%s3802_s3 + $0x38] sm:$0xff] }
 0x261   : > { %v1366_v58 = vperm.slane %v470_v48, 1  ;;  %v1387_v18 = vperm.slane %v470_v48, 4  ;;  %v1380_v38 = vperm.slane %v470_v48, 3  ;;  %v1401_v50 = vperm.slane %v470_v48, 6 }
 0x263   : > { %1259 = vperm.xlu0 %2454, %v1254_v51   ;;  %v927_v51 = vperm.slane %v848_v28, %v872_v20  ;;  %v929_v28 = vperm.slane %v851_v5, %v876_v25  ;;  %v888_v20 = vadd.s32 4294967240, %v3234_v53 }
 0x265   : > { %v928_v4 = vsel %vm874_vm2, %v927_v51, %v926_v12  ;;  %v905_v5 = vperm.slane %v3205_v6, %v888_v20  ;;  %v889_v27 = vperm.slane %v3180_v54, %v888_v20  ;;  %v935_v10 = vperm.slane %v860_v29, %v888_v20 }
 0x266   : > { %v930_v19 = vsel %vm878_vm3, %v929_v28, %v928_v4  ;;  %v920_v40 = vperm.slane %v3229_v22, %v888_v20  ;;  %v1338_v22 = vperm.slane %v3222_v9, 5  ;;  %v1408_v12 = vperm.slane %v470_v48, 7 }
 0x267   : > { %1287 = vperm.xlu1 %2455, %v1282_v56   ;;  %v877_v56 = vperm.slane %v3172_v52, %v876_v25  ;;  %v901_v52 = vperm.slane %v3195_v34, %v3247_v41  ;;  %v932_v17 = vsel %vm882_vm4, %v931_v16, %v930_v19  ;;  %v3820_v20 = vmov 0  }
 0x269   : > { %v879_v37 = vsel %vm878_vm3, %v877_v56, %v875_v32  ;;  %v902_v62 = vsel %vm882_vm4, %v901_v52, %v900_v31  ;;  %v1359_v32 = vperm.slane %v470_v48, 0  ;;  %v1015_v4 = vpop.permute.xlu1 %1014 }
 0x26b   : > { %1280 = vperm.xlu0 %2454, %v1275_v23   ;;  %v884_v23 = vadd.s32 4294967248, %v3234_v53 }
 0x26d   : > { %v918_v34 = vperm.slane %v3227_v33, %v884_v23  ;;  %v885_v25 = vperm.slane %v3178_v45, %v884_v23  ;;  %v933_v21 = vperm.slane %v857_v47, %v884_v23  ;;  %v883_v33 = vsel %vm882_vm4, %v881_v24, %v879_v37  ;;  %v1008_v31 = vpop.permute.xlu0 %1007 }
 0x26e   : > { %v903_v45 = vperm.slane %v3202_v26, %v884_v23  ;;  %v1345_v26 = vperm.slane %v3222_v9, 6  ;;  %v1352_v47 = vperm.slane %v3222_v9, 7 }
 0x26f   : > { %1308 = vperm.xlu1 %2455, %v1303_v59   ;;  %v3297_v59 = vpop.permute.xlu2 %1035  ;;  %v919_v61 = vsel %vm886_vm5, %v918_v34, %v917_v60  ;;  %v887_v6 = vsel %vm886_vm5, %v885_v25, %v883_v33  ;;  %v934_v3 = vsel %vm886_vm5, %v933_v21, %v932_v17  ;;  %v1394_v34 = vperm.slane %v470_v48, 5 }
 0x270   : > { %v904_v41 = vsel %vm886_vm5, %v903_v45, %v902_v62  ;;  %v921_v54 = vsel %vm890_vm6, %v920_v40, %v919_v61  ;;  %v891_v55 = vsel %vm890_vm6, %v889_v27, %v887_v6  ;;  %v936_v8 = vsel %vm890_vm6, %v935_v10, %v934_v3 }
 0x271   : > { %v906_v36 = vsel %vm890_vm6, %v905_v5, %v904_v41  ;;  %v1029_v37 = vpop.permute.xlu1 %1028 }
 0x272   : > { %v938_v51 = vsel %vm937_vm7, %v906_v36, %v891_v55 }
 0x273   : > { %1301 = vperm.xlu0 %2454, %v1296_v14   ;;  %v940_v14 = vsel %vm939_vm8, %v921_v54, %v938_v51 }
 0x274   : > { %v942_v49 = vsel %vm941_vm9, %v936_v8, %v940_v14 }
 0x275   : > { %v945_v56 = vsel %vm944_vm10, %v942_v49, 0.0  ;;  %v1022_v46 = vpop.permute.xlu0 %1021 }
 0x277   : > { %1329 = vperm.xlu1 %2455, %v1324_v11   ;;  %v3318_v44 = vpop.permute.xlu2 %1084  ;;  %v1373_v11 = vperm.slane %v470_v48, 2 }
 0x279   : > { %v1050_v60 = vpop.permute.xlu1 %1049 }
 0x27b   : > { %1322 = vperm.xlu0 %2454, %v1317_v7  }
 0x27d   : > { %v1043_v19 = vpop.permute.xlu0 %1042 }
 0x27f   : > { %1350 = vperm.xlu1 %2455, %v1345_v26   ;;  %v3323_v23 = vpop.permute.xlu2 %1105 }
 0x281   : > { %v1064_v21 = vpop.permute.xlu1 %1063 }
 0x283   : > { %1343 = vperm.xlu0 %2454, %v1338_v22  }
 0x284   : > { %946 = vadd.xlane.f32.xlu2 %v945_v56 }
 0x285   : > { %v1057_v29 = vpop.permute.xlu0 %1056 }
 0x287   : > { %1371 = vperm.xlu1 %2455, %v1366_v58   ;;  %v3325_v28 = vpop.permute.xlu2 %1126 }
 0x289   : > { %v1078_v5 = vpop.permute.xlu1 %1077 }
 0x28b   : > { %1364 = vperm.xlu0 %2454, %v1359_v32  }
 0x28d   : > { %v1071_v16 = vpop.permute.xlu0 %1070 }
 0x28f   : > { %1392 = vperm.xlu1 %2455, %v1387_v18   ;;  %v3328_v52 = vpop.permute.xlu2 %1147 }
 0x291   : > { %v1099_v33 = vpop.permute.xlu1 %1098 }
 0x293   : > { %1385 = vperm.xlu0 %2454, %v1380_v38  }
 0x295   : > { %v3344_v45 = vpop.permute.xlu0 %1091 }
 0x297   : > { %1413 = vperm.xlu1 %2455, %v1408_v12   ;;  %v3333_v24 = vpop.permute.xlu2 %1168 }
 0x299   : > { %v1120_v61 = vpop.permute.xlu1 %1119 }
 0x29b   : > { %1406 = vperm.xlu0 %2454, %v1401_v50  }
 0x29c   : > { %1336 = vperm.xlu2 %2456, %v1331_v63  }
 0x29d   : > { %v3348_v17 = vpop.permute.xlu0 %1112 }
 0x29f   : > { %2459 = vset.pattern.permute.xlu1 %v3820_v20  ;;  %v3335_v25 = vpop.permute.xlu2 %1189 }
 0x2a1   : > { %v3352_v6 = vpop.permute.xlu1 %1140 }
 0x2a3   : > { %2458 = vset.pattern.permute.xlu0 %v3820_v20 }
 0x2a4   : > { %1357 = vperm.xlu2 %2456, %v1352_v47  }
 0x2a5   : > { %v3354_v41 = vpop.permute.xlu0 %1133 }
 0x2a7   : > { %v3338_v9 = vpop.permute.xlu2 %1210 }
 0x2a9   : > { %v3356_v3 = vpop.permute.xlu1 %1161 }
 0x2ac   : > { %1378 = vperm.xlu2 %2456, %v1373_v11  }
 0x2ad   : > { %v3358_v36 = vpop.permute.xlu0 %1154 }
 0x2af   : > { %v3340_v62 = vpop.permute.xlu2 %1231 }
 0x2b1   : > { %v3361_v55 = vpop.permute.xlu1 %1182 }
 0x2b4   : > { %1399 = vperm.xlu2 %2456, %v1394_v34  }
 0x2b5   : > { %v3365_v51 = vpop.permute.xlu0 %1175 }
 0x2b7   : > { %v3342_v7 = vpop.permute.xlu2 %1252 }
 0x2b9   : > { %v3373_v48 = vpop.permute.xlu1 %1203 }
 0x2bc   : > { %2457 = vset.pattern.permute.xlu2 %v3820_v20 }
 0x2bd   : > { %v3377_v56 = vpop.permute.xlu0 %1196 }
 0x2bf   : > { %v3346_v27 = vpop.permute.xlu2 %1273 }
 0x2c1   : > { %v3388_v18 = vpop.permute.xlu1 %1224 }
 0x2c5   : > { %v3391_v38 = vpop.permute.xlu0 %1217 }
 0x2c7   : > { %v3350_v10 = vpop.permute.xlu2 %1294 }
 0x2c9   : > { %v3396_v63 = vpop.permute.xlu1 %1245 }
 0x2cf   : > { %v1316_v40 = vpop.permute.xlu2 %1315 }
 0x2d1   : > { %v3403_v11 = vpop.permute.xlu1 %1266 }
 0x2f7   : > { %v947_v26 = vpop.xlane.xlu2 %946 }
 0x2f8   : > { %v957_v54 = vadd.f32 %v3139_v15, %v947_v26 }
 0x2fa   : > { %v3363_v8 = vmax.f32 %v957_v54, 0.0 }
 0x2fc   : > { %v1479_v22 = vmul.f32 %v3159_v39, %v3363_v8  ;;  %v1480_v14 = vmul.f32 %v3142_v0, %v3363_v8  ;;  %v1481_v49 = vmul.f32 %v3154_v57, %v3363_v8  ;;  %v1483_v15 = vmul.f32 %v3157_v43, %v3363_v8 }
 0x2fd   : > { %v1485_v58 = vmul.f32 %v1015_v4, %v3363_v8  ;;  %v1482_v39 = vmul.f32 %v3165_v42, %v3363_v8  ;;  %v3383_v0 = vmul.f32 %v1316_v40, %v3363_v8  ;;  %v1486_v57 = vmul.f32 %v1022_v46, %v3363_v8 }
 0x2fe   : > { %1614 = vperm.xlu1 %2459, %v1481_v49   ;;  %1611 = vperm.xlu0 %2458, %v1480_v14   ;;  %v1488_v32 = vmul.f32 %v3297_v59, %v3363_v8  ;;  %v1484_v43 = vmul.f32 %v1008_v31, %v3363_v8  ;;  %v1489_v42 = vmul.f32 %v1043_v19, %v3363_v8  ;;  %v3398_v59 = vpop.permute.xlu0 %1238 }
 0x2ff   : > { %1608 = vperm.xlu2 %2457, %v1479_v22   ;;  %v1491_v12 = vmul.f32 %v1057_v29, %v3363_v8  ;;  %v1487_v50 = vmul.f32 %v1029_v37, %v3363_v8  ;;  %v1492_v4 = vmul.f32 %v1064_v21, %v3363_v8  ;;  %v1494_v47 = vmul.f32 %v1078_v5, %v3363_v8  ;;  %v3411_v21 = vpop.permute.xlu1 %1287 }
 0x300   : > { %v1490_v31 = vmul.f32 %v1050_v60, %v3363_v8  ;;  %v1495_v37 = vmul.f32 %v3318_v44, %v3363_v8  ;;  %v1497_v34 = vmul.f32 %v1099_v33, %v3363_v8  ;;  %v1493_v19 = vmul.f32 %v1071_v16, %v3363_v8  ;;  %v3422_v16 = vpop.permute.xlu2 %1336 }
 0x301   : > { %v1498_v60 = vmul.f32 %v3323_v23, %v3363_v8  ;;  %v1500_v5 = vmul.f32 %v1120_v61, %v3363_v8  ;;  %v1496_v40 = vmul.f32 %v3344_v45, %v3363_v8  ;;  %v1501_v44 = vmul.f32 %v3325_v28, %v3363_v8 }
 0x302   : > { %v1503_v33 = vmul.f32 %v3352_v6, %v3363_v8  ;;  %v1499_v23 = vmul.f32 %v3348_v17, %v3363_v8  ;;  %v1504_v45 = vmul.f32 %v3328_v52, %v3363_v8  ;;  %v1506_v28 = vmul.f32 %v3356_v3, %v3363_v8 }
 0x303   : > { %v1502_v54 = vmul.f32 %v3354_v41, %v3363_v8  ;;  %v1507_v14 = vmul.f32 %v3333_v24, %v3363_v8  ;;  %v1509_v52 = vmul.f32 %v3361_v55, %v3363_v8  ;;  %v1505_v3 = vmul.f32 %v3358_v36, %v3363_v8 }
 0x304   : > { %v1512_v24 = vmul.f32 %v3373_v48, %v3363_v8  ;;  %v1508_v55 = vmul.f32 %v3365_v51, %v3363_v8  ;;  %v1511_v48 = vmul.f32 %v3377_v56, %v3363_v8 }
 0x306   : > { %1620 = vperm.xlu1 %2459, %v1483_v15   ;;  %1626 = vperm.xlu0 %2458, %v1485_v58   ;;  %v3405_v46 = vpop.permute.xlu0 %1259  ;;  %v1510_v58 = vmul.f32 %v3335_v25, %v3363_v8 }
 0x307   : > { %1617 = vperm.xlu2 %2457, %v1482_v39   ;;  %v3426_v26 = vpop.permute.xlu1 %1308  ;;  %v1513_v39 = vmul.f32 %v3338_v9, %v3363_v8  ;;  %v1518_v9 = vmul.f32 %v3396_v63, %v3363_v8  ;;  %v1517_v63 = vmul.f32 %v3398_v59, %v3363_v8 }
 0x308   : > { %v3438_v6 = vpop.permute.xlu2 %1357 }
 0x30e   : > { %1629 = vperm.xlu1 %2459, %v1486_v57   ;;  %1635 = vperm.xlu0 %2458, %v1488_v32   ;;  %v3415_v29 = vpop.permute.xlu0 %1280  ;;  %v1515_v32 = vmul.f32 %v3388_v18, %v3363_v8 }
 0x30f   : > { %1623 = vperm.xlu2 %2457, %v1484_v43   ;;  %v3440_v22 = vpop.permute.xlu1 %1329  ;;  %v1516_v43 = vmul.f32 %v3340_v62, %v3363_v8  ;;  %v1521_v62 = vmul.f32 %v3403_v11, %v3363_v8  ;;  %v1520_v11 = vmul.f32 %v3405_v46, %v3363_v8  ;;  %v1527_v46 = vmul.f32 %v3426_v26, %v3363_v8 }
 0x310   : > { %v3450_v41 = vpop.permute.xlu2 %1378 }
 0x316   : > { %1638 = vperm.xlu1 %2459, %v1489_v42   ;;  %1644 = vperm.xlu0 %2458, %v1491_v12   ;;  %v3430_v61 = vpop.permute.xlu0 %1301  ;;  %v1514_v42 = vmul.f32 %v3391_v38, %v3363_v8 }
 0x317   : > { %1632 = vperm.xlu2 %2457, %v1487_v50   ;;  %v3452_v49 = vpop.permute.xlu1 %1350  ;;  %v1519_v50 = vmul.f32 %v3342_v7, %v3363_v8  ;;  %v1524_v7 = vmul.f32 %v3411_v21, %v3363_v8 }
 0x318   : > { %v3462_v36 = vpop.permute.xlu2 %1399 }
 0x31e   : > { %1647 = vperm.xlu1 %2459, %v1492_v4   ;;  %1653 = vperm.xlu0 %2458, %v1494_v47   ;;  %v3442_v17 = vpop.permute.xlu0 %1322 }
 0x31f   : > { %1641 = vperm.xlu2 %2457, %v1490_v31   ;;  %v3466_v57 = vpop.permute.xlu1 %1371  ;;  %v1522_v31 = vmul.f32 %v3346_v27, %v3363_v8  ;;  %v1525_v27 = vmul.f32 %v3350_v10, %v3363_v8 }
 0x326   : > { %1656 = vperm.xlu1 %2459, %v1495_v37   ;;  %1662 = vperm.xlu0 %2458, %v1497_v34   ;;  %v3454_v15 = vpop.permute.xlu0 %1343 }
 0x327   : > { %1650 = vperm.xlu2 %2457, %v1493_v19   ;;  %v3480_v12 = vpop.permute.xlu1 %1392 }
 0x32e   : > { %1665 = vperm.xlu1 %2459, %v1498_v60   ;;  %1671 = vperm.xlu0 %2458, %v1500_v5   ;;  %v3470_v25 = vpop.permute.xlu0 %1364 }
 0x32f   : > { %1659 = vperm.xlu2 %2457, %v1496_v40   ;;  %v3490_v38 = vpop.permute.xlu1 %1413 }
 0x336   : > { %1674 = vperm.xlu1 %2459, %v1501_v44   ;;  %1680 = vperm.xlu0 %2458, %v1503_v33   ;;  %v3482_v18 = vpop.permute.xlu0 %1385  ;;  %v1523_v33 = vmul.f32 %v3415_v29, %v3363_v8 }
 0x337   : > { %1668 = vperm.xlu2 %2457, %v1499_v23  }
 0x33e   : > { %1683 = vperm.xlu1 %2459, %v1504_v45   ;;  %1689 = vperm.xlu0 %2458, %v1506_v28   ;;  %v3492_v4 = vpop.permute.xlu0 %1406 }
 0x33f   : > { %1677 = vperm.xlu2 %2457, %v1502_v54  }
 0x346   : > { %1692 = vperm.xlu1 %2459, %v1507_v14   ;;  %1698 = vperm.xlu0 %2458, %v1509_v52  }
 0x347   : > { %1686 = vperm.xlu2 %2457, %v1505_v3   ;;  %v1530_v3 = vmul.f32 %v3440_v22, %v3363_v8 }
 0x34e   : > { %1701 = vperm.xlu1 %2459, %v1510_v58   ;;  %1707 = vperm.xlu0 %2458, %v1512_v24   ;;  %v1526_v24 = vmul.f32 %v3430_v61, %v3363_v8  ;;  %v1531_v61 = vmul.f32 %v3422_v16, %v3363_v8  ;;  %v1536_v16 = vmul.f32 %v3466_v57, %v3363_v8 }
 0x34f   : > { %1695 = vperm.xlu2 %2457, %v1508_v55   ;;  %v1535_v57 = vmul.f32 %v3470_v25, %v3363_v8 }
 0x356   : > { %1710 = vperm.xlu1 %2459, %v1513_v39   ;;  %1716 = vperm.xlu0 %2458, %v1515_v32  }
 0x357   : > { %1704 = vperm.xlu2 %2457, %v1511_v48  }
 0x359   : > { %v1609_v51 = vpop.permute.xlu2 %1608 }
 0x35a   : > { %v1799_v19 = vperm.slane %v1609_v51, %v3234_v53 }
 0x35e   : > { %1719 = vperm.xlu1 %2459, %v1516_v43   ;;  %1725 = vperm.xlu0 %2458, %v1518_v9   ;;  %v1533_v9 = vmul.f32 %v3452_v49, %v3363_v8 }
 0x35f   : > { %1713 = vperm.xlu2 %2457, %v1514_v42   ;;  %v1529_v42 = vmul.f32 %v3442_v17, %v3363_v8 }
 0x361   : > { %v1618_v56 = vpop.permute.xlu2 %1617 }
 0x362   : > { %v1802_v21 = vperm.slane %v1618_v56, %v3234_v53 }
 0x366   : > { %1728 = vperm.xlu1 %2459, %v1519_v50   ;;  %1734 = vperm.xlu0 %2458, %v1521_v62  }
 0x367   : > { %1722 = vperm.xlu2 %2457, %v1517_v63   ;;  %v1534_v63 = vmul.f32 %v3438_v6, %v3363_v8  ;;  %v1539_v6 = vmul.f32 %v3480_v12, %v3363_v8 }
 0x369   : > { %v1624_v47 = vpop.permute.xlu2 %1623 }
 0x36a   : > { %v1804_v54 = vperm.slane %v1624_v47, %v3234_v53  ;;  %v1532_v47 = vmul.f32 %v3454_v15, %v3363_v8 }
 0x36e   : > { %1737 = vperm.xlu1 %2459, %v1522_v31   ;;  %1743 = vperm.xlu0 %2458, %v1524_v7   ;;  %v1537_v7 = vmul.f32 %v3450_v41, %v3363_v8  ;;  %v1538_v41 = vmul.f32 %v3482_v18, %v3363_v8 }
 0x36f   : > { %1731 = vperm.xlu2 %2457, %v1520_v11  }
 0x370   : > { %v1615_v59 = vpop.permute.xlu1 %1614  ;;  %v1612_v34 = vpop.permute.xlu0 %1611 }
 0x371   : > { %v1801_v37 = vperm.slane %v1615_v59, %v3234_v53  ;;  %v1633_v60 = vpop.permute.xlu2 %1632  ;;  %v1800_v5 = vperm.slane %v1612_v34, %v3234_v53  ;;  %v1542_v34 = vmul.f32 %v3490_v38, %v3363_v8 }
 0x372   : > { %v1807_v48 = vperm.slane %v1633_v60, %v3234_v53  ;;  %v1541_v60 = vmul.f32 %v3492_v4, %v3363_v8 }
 0x373   : > { %v1863_v40 = vsel %vm937_vm7, %v1800_v5, %v1799_v19 }
 0x374   : > { %v1864_v44 = vsel %vm939_vm8, %v1801_v37, %v1863_v40  ;;  %v1540_v37 = vmul.f32 %v3462_v36, %v3363_v8 }
 0x375   : > { %v1865_v23 = vsel %vm941_vm9, %v1802_v21, %v1864_v44 }
 0x376   : > { %1746 = vperm.xlu1 %2459, %v1525_v27   ;;  %1752 = vperm.xlu0 %2458, %v1527_v46  }
 0x377   : > { %1740 = vperm.xlu2 %2457, %v1523_v33  }
 0x378   : > { %v1621_v45 = vpop.permute.xlu1 %1620  ;;  %v1627_v28 = vpop.permute.xlu0 %1626 }
 0x379   : > { %v1803_v10 = vperm.slane %v1621_v45, %v3234_v53  ;;  %v3515_v14 = vpop.permute.xlu2 %1641  ;;  %v1805_v29 = vperm.slane %v1627_v28, %v3234_v53 }
 0x37b   : > { %v1867_v26 = vsel %vm1866_vm11, %v1803_v10, %v1865_v23 }
 0x37c   : > { %v1869_v52 = vsel %vm1868_vm12, %v1804_v54, %v1867_v26 }
 0x37d   : > { %v1871_v58 = vsel %vm1870_vm13, %v1805_v29, %v1869_v52 }
 0x37e   : > { %1755 = vperm.xlu1 %2459, %v3383_v0   ;;  %1761 = vperm.xlu0 %2458, %v1530_v3   ;;  %v1810_v3 = vperm.slane %v3515_v14, %v3234_v53 }
 0x37f   : > { %1749 = vperm.xlu2 %2457, %v1526_v24  }
 0x380   : > { %v1630_v55 = vpop.permute.xlu1 %1629  ;;  %v1636_v32 = vpop.permute.xlu0 %1635 }
 0x381   : > { %v1806_v39 = vperm.slane %v1630_v55, %v3234_v53  ;;  %v3528_v51 = vpop.permute.xlu2 %1650  ;;  %v1808_v22 = vperm.slane %v1636_v32, %v3234_v53 }
 0x383   : > { %v3532_v43 = vsel %vm1872_vm14, %v1806_v39, %v1871_v58  ;;  %v3537_v0 = vsel %vm937_vm7, %v1808_v22, %v1807_v48 }
 0x386   : > { %1764 = vperm.xlu1 %2459, %v1531_v61   ;;  %1770 = vperm.xlu0 %2458, %v1533_v9  }
 0x387   : > { %1758 = vperm.xlu2 %2457, %v1529_v42  }
 0x388   : > { %v1639_v56 = vpop.permute.xlu1 %1638  ;;  %v3543_v50 = vpop.permute.xlu0 %1644 }
 0x389   : > { %v1660_v62 = vpop.permute.xlu2 %1659  ;;  %v1809_v45 = vperm.slane %v1639_v56, %v3234_v53 }
 0x38a   : > { %v1816_v46 = vperm.slane %v1660_v62, %v3234_v53 }
 0x38b   : > { %v1875_v29 = vsel %vm939_vm8, %v1809_v45, %v3537_v0  ;;  %v1811_v0 = vperm.slane %v3543_v50, %v3234_v53 }
 0x38c   : > { %v1876_v32 = vsel %vm941_vm9, %v1810_v3, %v1875_v29 }
 0x38d   : > { %v1877_v42 = vsel %vm1866_vm11, %v1811_v0, %v1876_v32 }
 0x38e   : > { %1773 = vperm.xlu1 %2459, %v1534_v63   ;;  %1779 = vperm.xlu0 %2458, %v1536_v16   ;;  %v1932_v16 = vsel %vm1931_vm15, %v3532_v43, 0.0 }
 0x38f   : > { %1767 = vperm.xlu2 %2457, %v1532_v47   ;;  %v1813_v47 = vperm.slane %v3528_v51, %v3234_v53 }
 0x390   : > { %v3551_v17 = vpop.permute.xlu1 %1647  ;;  %v3553_v49 = vpop.permute.xlu0 %1653 }
 0x391   : > { %v1669_v31 = vpop.permute.xlu2 %1668  ;;  %v1812_v48 = vperm.slane %v3551_v17, %v3234_v53  ;;  %v1814_v51 = vperm.slane %v3553_v49, %v3234_v53 }
 0x392   : > { %v1819_v10 = vperm.slane %v1669_v31, %v3234_v53 }
 0x393   : > { %v1878_v56 = vsel %vm1868_vm12, %v1812_v48, %v1877_v42 }
 0x396   : > { %1782 = vperm.xlu1 %2459, %v1537_v7   ;;  %1788 = vperm.xlu0 %2458, %v1539_v6  }
 0x397   : > { %1776 = vperm.xlu2 %2457, %v1535_v57  }
 0x398   : > { %v1657_v15 = vpop.permute.xlu1 %1656  ;;  %v1663_v11 = vpop.permute.xlu0 %1662 }
 0x399   : > { %v1678_v59 = vpop.permute.xlu2 %1677  ;;  %v1815_v40 = vperm.slane %v1657_v15, %v3234_v53  ;;  %v1817_v8 = vperm.slane %v1663_v11, %v3234_v53 }
 0x39a   : > { %v1822_v22 = vperm.slane %v1678_v59, %v3234_v53  ;;  %v1879_v59 = vsel %vm1870_vm13, %v1813_v47, %v1878_v56 }
 0x39e   : > { %1791 = vperm.xlu1 %2459, %v1540_v37   ;;  %1797 = vperm.xlu0 %2458, %v1542_v34  }
 0x39f   : > { %1785 = vperm.xlu2 %2457, %v1538_v41  }
 0x3a0   : > { %v1666_v12 = vpop.permute.xlu1 %1665  ;;  %v1672_v25 = vpop.permute.xlu0 %1671 }
 0x3a1   : > { %v1687_v19 = vpop.permute.xlu2 %1686  ;;  %v1820_v26 = vperm.slane %v1672_v25, %v3234_v53 }
 0x3a2   : > { %v1825_v50 = vperm.slane %v1687_v19, %v3234_v53  ;;  %v1880_v19 = vsel %vm1872_vm14, %v1814_v51, %v1879_v59 }
 0x3a6   : > { %2462 = vset.pattern.permute.xlu1 %v2804_v13  ;;  %2460 = vset.pattern.permute.xlu0 %v2769_v1  ;;  %v1881_v13 = vsel %vm937_vm7, %v1816_v46, %v1815_v40  ;;  %v1818_v1 = vperm.slane %v1666_v12, %v3234_v53 }
 0x3a7   : > { %1794 = vperm.xlu2 %2457, %v1541_v60   ;;  %v1882_v33 = vsel %vm939_vm8, %v1817_v8, %v1881_v13 }
 0x3a8   : > { %v1675_v36 = vpop.permute.xlu1 %1674  ;;  %v1681_v5 = vpop.permute.xlu0 %1680 }
 0x3a9   : > { %v3571_v38 = vpop.permute.xlu2 %1695  ;;  %v1821_v54 = vperm.slane %v1675_v36, %v3234_v53  ;;  %v1823_v14 = vperm.slane %v1681_v5, %v3234_v53 }
 0x3aa   : > { %v1828_v36 = vperm.slane %v3571_v38, %v3234_v53 }
 0x3af   : > { %2461 = vset.pattern.permute.xlu2 %v2772_v2  ;;  %v1883_v2 = vsel %vm941_vm9, %v1818_v1, %v1882_v33 }
 0x3b0   : > { %v1684_v27 = vpop.permute.xlu1 %1683  ;;  %v1690_v18 = vpop.permute.xlu0 %1689  ;;  %v1884_v28 = vsel %vm1866_vm11, %v1819_v10, %v1883_v2 }
 0x3b1   : > { %v1705_v21 = vpop.permute.xlu2 %1704  ;;  %v1885_v58 = vsel %vm1868_vm12, %v1820_v26, %v1884_v28  ;;  %v1824_v61 = vperm.slane %v1684_v27, %v3234_v53  ;;  %v1826_v37 = vperm.slane %v1690_v18, %v3234_v53  ;;  %v1935_v27 = vsel %vm1931_vm15, %v1880_v19, 0.0 }
 0x3b2   : > { %v1886_v39 = vsel %vm1870_vm13, %v1821_v54, %v1885_v58  ;;  %v1831_v7 = vperm.slane %v1705_v21, %v3234_v53 }
 0x3b3   : > { %v1887_v9 = vsel %vm1872_vm14, %v1822_v22, %v1886_v39  ;;  %v1888_v62 = vsel %vm937_vm7, %v1824_v61, %v1823_v14 }
 0x3b4   : > { %v1938_v31 = vsel %vm1931_vm15, %v1887_v9, 0.0  ;;  %v1889_v15 = vsel %vm939_vm8, %v1825_v50, %v1888_v62 }
 0x3b5   : > { %v1890_v12 = vsel %vm941_vm9, %v1826_v37, %v1889_v15 }
 0x3b8   : > { %v1693_v4 = vpop.permute.xlu1 %1692  ;;  %v3579_v44 = vpop.permute.xlu0 %1698 }
 0x3b9   : > { %v1714_v23 = vpop.permute.xlu2 %1713  ;;  %v1827_v11 = vperm.slane %v1693_v4, %v3234_v53  ;;  %v1829_v13 = vperm.slane %v3579_v44, %v3234_v53 }
 0x3ba   : > { %v1834_v25 = vperm.slane %v1714_v23, %v3234_v53 }
 0x3bb   : > { %v1891_v60 = vsel %vm1866_vm11, %v1827_v11, %v1890_v12 }
 0x3bc   : > { %v1892_v8 = vsel %vm1868_vm12, %v1828_v36, %v1891_v60 }
 0x3bd   : > { %v1893_v2 = vsel %vm1870_vm13, %v1829_v13, %v1892_v8 }
 0x3c0   : > { %v1702_v52 = vpop.permute.xlu1 %1701  ;;  %v1708_v24 = vpop.permute.xlu0 %1707 }
 0x3c1   : > { %v1723_v55 = vpop.permute.xlu2 %1722  ;;  %v1832_v63 = vperm.slane %v1708_v24, %v3234_v53  ;;  %v1830_v21 = vperm.slane %v1702_v52, %v3234_v53 }
 0x3c2   : > { %v1837_v38 = vperm.slane %v1723_v55, %v3234_v53 }
 0x3c3   : > { %v1895_v34 = vsel %vm937_vm7, %v1832_v63, %v1831_v7  ;;  %v1894_v10 = vsel %vm1872_vm14, %v1830_v21, %v1893_v2 }
 0x3c4   : > { %v1941_v44 = vsel %vm1931_vm15, %v1894_v10, 0.0 }
 0x3c8   : > { %v1711_v17 = vpop.permute.xlu1 %1710  ;;  %1933 = vadd.xlane.f32.xlu1 %v1932_v16  ;;  %1939 = vadd.xlane.f32.xlu0 %v1938_v31  ;;  %v1717_v57 = vpop.permute.xlu0 %1716 }
 0x3c9   : > { %v1833_v6 = vperm.slane %v1711_v17, %v3234_v53  ;;  %v1732_v43 = vpop.permute.xlu2 %1731  ;;  %v1835_v49 = vperm.slane %v1717_v57, %v3234_v53 }
 0x3ca   : > { %v1840_v58 = vperm.slane %v1732_v43, %v3234_v53 }
 0x3cb   : > { %v1896_v41 = vsel %vm939_vm8, %v1833_v6, %v1895_v34 }
 0x3cc   : > { %v1897_v5 = vsel %vm941_vm9, %v1834_v25, %v1896_v41 }
 0x3cd   : > { %v1898_v1 = vsel %vm1866_vm11, %v1835_v49, %v1897_v5  ;;  %v2472_v5 = vld [vmem:[%s3803_s4] ss:$0 sm:$0xff] }
 0x3d0   : > { %v1720_v18 = vpop.permute.xlu1 %1719  ;;  %1936 = vadd.xlane.f32.xlu2 %v1935_v27  ;;  %v1726_v46 = vpop.permute.xlu0 %1725 }
 0x3d1   : > { %v1836_v40 = vperm.slane %v1720_v18, %v3234_v53  ;;  %v1741_v33 = vpop.permute.xlu2 %1740  ;;  %v1838_v23 = vperm.slane %v1726_v46, %v3234_v53 }
 0x3d2   : > { %v1843_v0 = vperm.slane %v1741_v33, %v3234_v53 }
 0x3d3   : > { %v1899_v4 = vsel %vm1868_vm12, %v1836_v40, %v1898_v1 }
 0x3d4   : > { %v1900_v45 = vsel %vm1870_vm13, %v1837_v38, %v1899_v4 }
 0x3d5   : > { %v1901_v28 = vsel %vm1872_vm14, %v1838_v23, %v1900_v45 }
 0x3d6   : > { %v1944_v54 = vsel %vm1931_vm15, %v1901_v28, 0.0 }
 0x3d7   : > { %1945 = vadd.xlane.f32.xlu1 %v1944_v54 }
 0x3d8   : > { %v1729_v26 = vpop.permute.xlu1 %1728  ;;  %1942 = vadd.xlane.f32.xlu2 %v1941_v44  ;;  %v1735_v29 = vpop.permute.xlu0 %1734 }
 0x3d9   : > { %v1839_v52 = vperm.slane %v1729_v26, %v3234_v53  ;;  %v1750_v3 = vpop.permute.xlu2 %1749  ;;  %v1841_v24 = vperm.slane %v1735_v29, %v3234_v53 }
 0x3da   : > { %v1846_v16 = vperm.slane %v1750_v3, %v3234_v53 }
 0x3db   : > { %v1902_v55 = vsel %vm937_vm7, %v1840_v58, %v1839_v52 }
 0x3dc   : > { %v1903_v22 = vsel %vm939_vm8, %v1841_v24, %v1902_v55 }
 0x3e0   : > { %v1738_v39 = vpop.permute.xlu1 %1737  ;;  %v1744_v48 = vpop.permute.xlu0 %1743 }
 0x3e1   : > { %v1842_v32 = vperm.slane %v1738_v39, %v3234_v53  ;;  %v1759_v14 = vpop.permute.xlu2 %1758  ;;  %v1844_v42 = vperm.slane %v1744_v48, %v3234_v53 }
 0x3e2   : > { %v1849_v59 = vperm.slane %v1759_v14, %v3234_v53 }
 0x3e3   : > { %v1904_v61 = vsel %vm941_vm9, %v1842_v32, %v1903_v22  ;;  %v3821_v22 = vld [vmem:[#allocation9_spill] sm:$0xff] }
 0x3e4   : > { %v1905_v9 = vsel %vm1866_vm11, %v1843_v0, %v1904_v61  ;;  %v3822_v61 = vld [vmem:[#allocation8_spill] sm:$0xff] }
 0x3e5   : > { %v1906_v47 = vsel %vm1868_vm12, %v1844_v42, %v1905_v9 }
 0x3e8   : > { %v1747_v56 = vpop.permute.xlu1 %1746  ;;  %v1753_v63 = vpop.permute.xlu0 %1752 }
 0x3e9   : > { %v1845_v62 = vperm.slane %v1747_v56, %v3234_v53  ;;  %v1768_v6 = vpop.permute.xlu2 %1767  ;;  %v1847_v11 = vperm.slane %v1753_v63, %v3234_v53 }
 0x3ea   : > { %v1852_v36 = vperm.slane %v1768_v6, %v3234_v53 }
 0x3eb   : > { %v1907_v50 = vsel %vm1870_vm13, %v1845_v62, %v1906_v47 }
 0x3ec   : > { %v1908_v17 = vsel %vm1872_vm14, %v1846_v16, %v1907_v50 }
 0x3ed   : > { %v1947_v31 = vsel %vm1931_vm15, %v1908_v17, 0.0 }
 0x3ee   : > { %1948 = vadd.xlane.f32.xlu0 %v1947_v31 }
 0x3f0   : > { %v1756_v7 = vpop.permute.xlu1 %1755  ;;  %v1762_v15 = vpop.permute.xlu0 %1761 }
 0x3f1   : > { %v1848_v57 = vperm.slane %v1756_v7, %v3234_v53  ;;  %v1850_v34 = vperm.slane %v1762_v15, %v3234_v53  ;;  %v1777_v25 = vpop.permute.xlu2 %1776 }
 0x3f2   : > { %v1855_v33 = vperm.slane %v1777_v25, %v3234_v53 }
 0x3f3   : > { %v1909_v43 = vsel %vm937_vm7, %v1848_v57, %v1847_v11 }
 0x3f4   : > { %v1910_v51 = vsel %vm939_vm8, %v1849_v59, %v1909_v43 }
 0x3f5   : > { %v1911_v19 = vsel %vm941_vm9, %v1850_v34, %v1910_v51 }
 0x3f8   : > { %v1765_v37 = vpop.permute.xlu1 %1764  ;;  %v1771_v12 = vpop.permute.xlu0 %1770 }
 0x3f9   : > { %v1851_v41 = vperm.slane %v1765_v37, %v3234_v53  ;;  %v1853_v27 = vperm.slane %v1771_v12, %v3234_v53  ;;  %v1786_v38 = vpop.permute.xlu2 %1785 }
 0x3fa   : > { %v1858_v28 = vperm.slane %v1786_v38, %v3234_v53 }
 0x3fb   : > { %v1912_v60 = vsel %vm1866_vm11, %v1851_v41, %v1911_v19 }
 0x3fc   : > { %v1913_v49 = vsel %vm1868_vm12, %v1852_v36, %v1912_v60 }
 0x3fd   : > { %v1914_v46 = vsel %vm1870_vm13, %v1853_v27, %v1913_v49 }
 0x400   : > { %v1774_v18 = vpop.permute.xlu1 %1773  ;;  %v1780_v40 = vpop.permute.xlu0 %1779 }
 0x401   : > { %v1854_v21 = vperm.slane %v1774_v18, %v3234_v53  ;;  %v1856_v1 = vperm.slane %v1780_v40, %v3234_v53  ;;  %v1795_v54 = vpop.permute.xlu2 %1794 }
 0x402   : > { %1962 = vperm.xlu0 %2460, %v2472_v5   ;;  %v1861_v58 = vperm.slane %v1795_v54, %v3234_v53 }
 0x403   : > { %v1915_v8 = vsel %vm1872_vm14, %v1854_v21, %v1914_v46  ;;  %v1916_v45 = vsel %vm937_vm7, %v1856_v1, %v1855_v33 }
 0x404   : > { %v1950_v13 = vsel %vm1931_vm15, %v1915_v8, 0.0 }
 0x405   : > { %1951 = vadd.xlane.f32.xlu2 %v1950_v13 }
 0x408   : > { %v1783_v4 = vpop.permute.xlu1 %1782  ;;  %v1789_v2 = vpop.permute.xlu0 %1788 }
 0x409   : > { %v1857_v23 = vperm.slane %v1783_v4, %v3234_v53  ;;  %v1859_v26 = vperm.slane %v1789_v2, %v3234_v53 }
 0x40a   : > { %2467 = vset.pattern.permute.xlu0 %v2870_v35 }
 0x40b   : > { %v1917_v10 = vsel %vm939_vm8, %v1857_v23, %v1916_v45 }
 0x40c   : > { %v1918_v44 = vsel %vm941_vm9, %v1858_v28, %v1917_v10 }
 0x40d   : > { %v1919_v24 = vsel %vm1866_vm11, %v1859_v26, %v1918_v44 }
 0x410   : > { %v1792_v29 = vpop.permute.xlu1 %1791  ;;  %v1798_v3 = vpop.permute.xlu0 %1797 }
 0x411   : > { %v1860_v52 = vperm.slane %v1792_v29, %v3234_v53  ;;  %v1862_v55 = vperm.slane %v1798_v3, %v3234_v53  ;;  %v3823_v53 = vld [vmem:[#allocation10_spill] sm:$0xff] }
 0x412   : > { %2004 = vperm.xlu0 %2467, %v2472_v5  }
 0x413   : > { %v1920_v35 = vsel %vm1868_vm12, %v1860_v52, %v1919_v24 }
 0x414   : > { %v1921_v39 = vsel %vm1870_vm13, %v1861_v58, %v1920_v35 }
 0x415   : > { %v1922_v32 = vsel %vm1872_vm14, %v1862_v55, %v1921_v39 }
 0x416   : > { %v1953_v48 = vsel %vm1931_vm15, %v1922_v32, 0.0 }
 0x417   : > { %1954 = vadd.xlane.f32.xlu1 %v1953_v48 }
 0x41a   : > { %2470 = vset.pattern.permute.xlu0 %v3820_v20 }
 0x41d   : > { %1968 = vperm.xlu2 %2461, %v2472_v5  }
 0x425   : > { %2463 = vset.pattern.permute.xlu2 %v2851_v30 }
 0x42d   : > { %1980 = vperm.xlu2 %2463, %v2472_v5  }
 0x430   : > { %1974 = vperm.xlu1 %2462, %v2472_v5  }
 0x435   : > { %2465 = vset.pattern.permute.xlu2 %v3821_v22 }
 0x438   : > { %2464 = vset.pattern.permute.xlu1 %v3822_v61 }
 0x43b   : > { %v3706_v0 = vpop.xlane.xlu0 %1939  ;;  %v1934_v42 = vpop.xlane.xlu1 %1933 }
 0x43d   : > { %1992 = vperm.xlu2 %2465, %v2472_v5  }
 0x440   : > { %1986 = vperm.xlu1 %2464, %v2472_v5  }
 0x443   : > { %v1937_v14 = vpop.xlane.xlu2 %1936 }
 0x445   : > { %2468 = vset.pattern.permute.xlu2 %v3820_v20 }
 0x448   : > { %2466 = vset.pattern.permute.xlu1 %v3823_v53 }
 0x44a   : > { %v3710_v19 = vpop.xlane.xlu1 %1945 }
 0x44b   : > { %v1943_v30 = vpop.xlane.xlu2 %1942 }
 0x450   : > { %1998 = vperm.xlu1 %2466, %v2472_v5  }
 0x458   : > { %2469 = vset.pattern.permute.xlu1 %v3820_v20 }
 0x461   : > { %v1949_v9 = vpop.xlane.xlu0 %1948 }
 0x474   : > { %v1963_v56 = vpop.permute.xlu0 %1962 }
 0x475   : > { %v2014_v62 = vadd.f32 %v1963_v56, %v1934_v42 }
 0x477   : > { %v2352_v63 = vmul.f32 -1.442695, %v2014_v62 }
 0x478   : > { %v3708_v16 = vpop.xlane.xlu2 %1951 }
 0x479   : > { %2489 = vpow2.f32 %v2352_v63 }
 0x47f   : > { %v2490_v47 = vpop.eup %2489 }
 0x480   : > { %v2046_v50 = vadd.f32 1.0, %v2490_v47  ;;  %v1969_v17 = vpop.permute.xlu2 %1968 }
 0x481   : > { %v2015_v31 = vadd.f32 %v1969_v17, %v1937_v14 }
 0x482   : > { %2491 = vrcp.f32 %v2046_v50  ;;  %v2065_v37 = vand.u32 2147483648, %v2046_v50  ;;  %v2063_v41 = vand.u32 2147483647, %v2046_v50  ;;  %vm2059_vm1 = vweird.f32 %v2046_v50 }
 0x483   : > { %v2353_v7 = vmul.f32 -1.442695, %v2015_v31 }
 0x484   : > { %v2066_v25 = vor.u32 1.1754944e-38, %v2065_v37  ;;  %vm2064_vm3 = vcmp.eq.f32.partialorder %v2063_v41, 8.507059e+37  ;;  %v2005_v1 = vpop.permute.xlu0 %2004 }
 0x485   : > { %2493 = vpow2.f32 %v2353_v7 }
 0x488   : > { %v2492_v20 = vpop.eup %2491  ;;  %v1981_v6 = vpop.permute.xlu2 %1980 }
 0x489   : > { %v2055_v57 = vmul.f32 %v2492_v20, %v2046_v50  ;;  %v2017_v15 = vadd.f32 %v1981_v6, %v1943_v30  ;;  %vm2060_vm0 = vweird.f32 %v2492_v20 }
 0x48a   : > { %vm2061_vm2 = vmor %vm2059_vm1, %vm2060_vm0  ;;  %v1955_v38 = vpop.xlane.xlu1 %1954 }
 0x48b   : > { %v2494_v11 = vpop.eup %2493  ;;  %v2056_v43 = vsub.f32 1.0, %v2055_v57  ;;  %v2355_v59 = vmul.f32 -1.442695, %v2017_v15  ;;  %v2021_v10 = vadd.f32 %v2005_v1, %v1955_v38 }
 0x48c   : > { %v2047_v51 = vadd.f32 1.0, %v2494_v11 }
 0x48d   : > { %2495 = vpow2.f32 %v2355_v59  ;;  %v2057_v34 = vmul.f32 %v2492_v20, %v2056_v43  ;;  %v2359_v3 = vmul.f32 -1.442695, %v2021_v10 }
 0x48e   : > { %2497 = vrcp.f32 %v2047_v51  ;;  %v2080_v13 = vand.u32 2147483648, %v2047_v51  ;;  %v2078_v33 = vand.u32 2147483647, %v2047_v51  ;;  %vm2074_vm5 = vweird.f32 %v2047_v51 }
 0x48f   : > { %v2058_v12 = vadd.f32 %v2492_v20, %v2057_v34 }
 0x490   : > { %v2081_v28 = vor.u32 1.1754944e-38, %v2080_v13  ;;  %vm2079_vm7 = vcmp.eq.f32.partialorder %v2078_v33, 8.507059e+37 }
 0x491   : > { %v2062_v60 = vsel %vm2061_vm2, %v2492_v20, %v2058_v12 }
 0x492   : > { %v2067_v36 = vsel %vm2064_vm3, %v2066_v25, %v2062_v60 }
 0x493   : > { %v2496_v5 = vpop.eup %2495  ;;  %v2174_v49 = vadd.f32 1.0, %v2067_v36 }
 0x494   : > { %v2498_v27 = vpop.eup %2497  ;;  %v2049_v18 = vadd.f32 1.0, %v2496_v5 }
 0x495   : > { %v2070_v21 = vmul.f32 %v2498_v27, %v2047_v51  ;;  %2184 = vperm.xlu2 %2468, %v2174_v49   ;;  %vm2075_vm4 = vweird.f32 %v2498_v27 }
 0x496   : > { %2499 = vrcp.f32 %v2049_v18  ;;  %vm2076_vm6 = vmor %vm2074_vm5, %vm2075_vm4  ;;  %v2110_v58 = vand.u32 2147483648, %v2049_v18  ;;  %v2108_v35 = vand.u32 2147483647, %v2049_v18  ;;  %vm2104_vm9 = vweird.f32 %v2049_v18 }
 0x497   : > { %v2071_v40 = vsub.f32 1.0, %v2070_v21  ;;  %v1993_v46 = vpop.permute.xlu2 %1992 }
 0x498   : > { %v2019_v8 = vadd.f32 %v1993_v46, %v1949_v9  ;;  %v2111_v22 = vor.u32 1.1754944e-38, %v2110_v58  ;;  %vm2109_vm11 = vcmp.eq.f32.partialorder %v2108_v35, 8.507059e+37 }
 0x499   : > { %v2072_v4 = vmul.f32 %v2498_v27, %v2071_v40 }
 0x49a   : > { %v2357_v23 = vmul.f32 -1.442695, %v2019_v8 }
 0x49b   : > { %v2073_v2 = vadd.f32 %v2498_v27, %v2072_v4 }
 0x49c   : > { %v2500_v45 = vpop.eup %2499  ;;  %2501 = vpow2.f32 %v2357_v23 }
 0x49d   : > { %v2100_v54 = vmul.f32 %v2500_v45, %v2049_v18  ;;  %v2077_v44 = vsel %vm2076_vm6, %v2498_v27, %v2073_v2  ;;  %vm2105_vm8 = vweird.f32 %v2500_v45  ;;  %2503 = vpow2.f32 %v2359_v3 }
 0x49e   : > { %v2082_v26 = vsel %vm2079_vm7, %v2081_v28, %v2077_v44  ;;  %vm2106_vm10 = vmor %vm2104_vm9, %vm2105_vm8 }
 0x49f   : > { %v2101_v29 = vsub.f32 1.0, %v2100_v54  ;;  %v2175_v52 = vadd.f32 1.0, %v2082_v26 }
 0x4a1   : > { %2189 = vperm.xlu1 %2469, %v2175_v52   ;;  %v2102_v24 = vmul.f32 %v2500_v45, %v2101_v29 }
 0x4a2   : > { %v1975_v55 = vpop.permute.xlu1 %1974  ;;  %v2502_v39 = vpop.eup %2501 }
 0x4a3   : > { %v2016_v32 = vadd.f32 %v1975_v55, %v3706_v0  ;;  %v2103_v48 = vadd.f32 %v2500_v45, %v2102_v24  ;;  %v2051_v14 = vadd.f32 1.0, %v2502_v39  ;;  %v2504_v42 = vpop.eup %2503 }
 0x4a4   : > { %v3713_v62 = vadd.f32 1.0, %v2504_v42 }
 0x4a5   : > { %v2354_v61 = vmul.f32 -1.442695, %v2016_v32  ;;  %v2107_v53 = vsel %vm2106_vm10, %v2500_v45, %v2103_v48  ;;  %v2140_v49 = vand.u32 2147483648, %v2051_v14  ;;  %vm2134_vm1 = vweird.f32 %v2051_v14 }
 0x4a6   : > { %v2112_v9 = vsel %vm2109_vm11, %v2111_v22, %v2107_v53  ;;  %v2138_v18 = vand.u32 2147483647, %v2051_v14  ;;  %v2170_v2 = vand.u32 2147483648, %v3713_v62  ;;  %vm2164_vm5 = vweird.f32 %v3713_v62 }
 0x4a7   : > { %2505 = vpow2.f32 %v2354_v61  ;;  %v2177_v30 = vadd.f32 1.0, %v2112_v9  ;;  %v2141_v13 = vor.u32 1.1754944e-38, %v2140_v49 }
 0x4a8   : > { %2507 = vrcp.f32 %v2051_v14  ;;  %vm2139_vm3 = vcmp.eq.f32.partialorder %v2138_v18, 8.507059e+37  ;;  %v2171_v29 = vor.u32 1.1754944e-38, %v2170_v2 }
 0x4a9   : > { %2199 = vperm.xlu1 %2469, %v2177_v30  }
 0x4ad   : > { %v2506_v56 = vpop.eup %2505 }
 0x4ae   : > { %v2048_v63 = vadd.f32 1.0, %v2506_v56  ;;  %v2508_v0 = vpop.eup %2507 }
 0x4af   : > { %v2130_v50 = vmul.f32 %v2508_v0, %v2051_v14  ;;  %vm2135_vm0 = vweird.f32 %v2508_v0 }
 0x4b0   : > { %2509 = vrcp.f32 %v2048_v63  ;;  %v2095_v43 = vand.u32 2147483648, %v2048_v63  ;;  %v2093_v51 = vand.u32 2147483647, %v2048_v63  ;;  %vm2089_vm13 = vweird.f32 %v2048_v63  ;;  %vm2136_vm2 = vmor %vm2134_vm1, %vm2135_vm0 }
 0x4b1   : > { %2511 = vrcp.f32 %v3713_v62  ;;  %v2131_v6 = vsub.f32 1.0, %v2130_v50  ;;  %v2521_v50 = vld [vmem:[%s2762_s25] sm:$0xff] }
 0x4b2   : > { %v1987_v47 = vpop.permute.xlu1 %1986  ;;  %vm2094_vm15 = vcmp.eq.f32.partialorder %v2093_v51, 8.507059e+37 }
 0x4b3   : > { %v2018_v17 = vadd.f32 %v1987_v47, %v3710_v19  ;;  %v2132_v37 = vmul.f32 %v2508_v0, %v2131_v6  ;;  %v2096_v19 = vor.u32 1.1754944e-38, %v2095_v43  ;;  %v2523_v6 = vld [vmem:[%s2762_s25 + $0x10] sm:$0xff] }
 0x4b5   : > { %v2356_v31 = vmul.f32 -1.442695, %v2018_v17  ;;  %v2133_v36 = vadd.f32 %v2508_v0, %v2132_v37  ;;  %v2526_v37 = vld [vmem:[%s2762_s25 + $0x38] sm:$0xff] }
 0x4b6   : > { %v2510_v7 = vpop.eup %2509 }
 0x4b7   : > { %v3717_v20 = vpop.eup %2511  ;;  %v2085_v57 = vmul.f32 %v2510_v7, %v2048_v63  ;;  %2513 = vpow2.f32 %v2356_v31  ;;  %vm2090_vm12 = vweird.f32 %v2510_v7  ;;  %v2137_v46 = vsel %vm2136_vm2, %v2508_v0, %v2133_v36  ;;  %v2522_v31 = vld [vmem:[%s2762_s25 + $0x8] sm:$0xff] }
 0x4b8   : > { %v2160_v11 = vmul.f32 %v3717_v20, %v3713_v62  ;;  %vm2091_vm14 = vmor %vm2089_vm13, %vm2090_vm12  ;;  %v2142_v4 = vsel %vm2139_vm3, %v2141_v13, %v2137_v46  ;;  %vm2165_vm4 = vweird.f32 %v3717_v20 }
 0x4b9   : > { %v2086_v15 = vsub.f32 1.0, %v2085_v57  ;;  %v2179_v10 = vadd.f32 1.0, %v2142_v4  ;;  %vm2166_vm6 = vmor %vm2164_vm5, %vm2165_vm4 }
 0x4ba   : > { %v2161_v12 = vsub.f32 1.0, %v2160_v11 }
 0x4bb   : > { %v2087_v59 = vmul.f32 %v2510_v7, %v2086_v15  ;;  %v2524_v15 = vld [vmem:[%s2762_s25 + $0x18] sm:$0xff] }
 0x4bc   : > { %v2162_v8 = vmul.f32 %v3717_v20, %v2161_v12  ;;  %v2527_v12 = vld [vmem:[%s2762_s25 + $0x20] sm:$0xff] }
 0x4bd   : > { %v2514_v34 = vpop.eup %2513  ;;  %v2088_v41 = vadd.f32 %v2510_v7, %v2087_v59  ;;  %v2525_v59 = vld [vmem:[%s2762_s25 + $0x30] sm:$0xff] }
 0x4be   : > { %v2050_v25 = vadd.f32 1.0, %v2514_v34  ;;  %v2163_v23 = vadd.f32 %v3717_v20, %v2162_v8  ;;  %v2532_v8 = vld [vmem:[%s2762_s25 + $0x78] sm:$0xff] }
 0x4bf   : > { %v2092_v60 = vsel %vm2091_vm14, %v2510_v7, %v2088_v41 }
 0x4c0   : > { %2515 = vrcp.f32 %v2050_v25  ;;  %v2097_v5 = vsel %vm2094_vm15, %v2096_v19, %v2092_v60  ;;  %v2125_v28 = vand.u32 2147483648, %v2050_v25  ;;  %v2123_v44 = vand.u32 2147483647, %v2050_v25  ;;  %v2528_v19 = vld [vmem:[%s2762_s25 + $0x28] sm:$0xff] }
 0x4c1   : > { %v2176_v27 = vadd.f32 1.0, %v2097_v5  ;;  %v2167_v26 = vsel %vm2166_vm6, %v3717_v20, %v2163_v23  ;;  %vm2119_vm8 = vweird.f32 %v2050_v25  ;;  %v2529_v5 = vld [vmem:[%s2762_s25 + $0x50] sm:$0xff] }
 0x4c2   : > { %v1999_v21 = vpop.permute.xlu1 %1998  ;;  %v2126_v24 = vor.u32 1.1754944e-38, %v2125_v28  ;;  %vm2124_vm11 = vcmp.eq.f32.partialorder %v2123_v44, 8.507059e+37 }
 0x4c3   : > { %v2020_v40 = vadd.f32 %v1999_v21, %v3708_v16  ;;  %2194 = vperm.xlu2 %2468, %v2176_v27   ;;  %v2168_v16 = vand.u32 2147483647, %v3713_v62  ;;  %v2530_v27 = vld [vmem:[%s2762_s25 + $0x58] sm:$0xff] }
 0x4c5   : > { %v2358_v38 = vmul.f32 -1.442695, %v2020_v40  ;;  %vm2169_vm9 = vcmp.eq.f32.partialorder %v2168_v16, 8.507059e+37  ;;  %v2531_v40 = vld [vmem:[%s2762_s25 + $0x70] sm:$0xff]  ;;  %v2536_v16 = vld [vmem:[%s2762_s25 + $0x68] sm:$0xff] }
 0x4c6   : > { %v2516_v1 = vpop.eup %2515  ;;  %v2172_v35 = vsel %vm2169_vm9, %v2171_v29, %v2167_v26 }
 0x4c7   : > { %v2115_v33 = vmul.f32 %v2516_v1, %v2050_v25  ;;  %2517 = vpow2.f32 %v2358_v38  ;;  %vm2120_vm7 = vweird.f32 %v2516_v1  ;;  %v2181_v48 = vadd.f32 1.0, %v2172_v35 }
 0x4c8   : > { %vm2121_vm10 = vmor %vm2119_vm8, %vm2120_vm7 }
 0x4c9   : > { %v2116_v45 = vsub.f32 1.0, %v2115_v33  ;;  %v2534_v33 = vld [vmem:[%s2762_s25 + $0x48] sm:$0xff] }
 0x4cb   : > { %2209 = vperm.xlu2 %2468, %v2179_v10   ;;  %v2117_v54 = vmul.f32 %v2516_v1, %v2116_v45  ;;  %v2535_v45 = vld [vmem:[%s2762_s25 + $0x60] sm:$0xff] }
 0x4cd   : > { %v2518_v52 = vpop.eup %2517  ;;  %v2118_v3 = vadd.f32 %v2516_v1, %v2117_v54 }
 0x4ce   : > { %v2052_v58 = vadd.f32 1.0, %v2518_v52 }
 0x4cf   : > { %v2122_v55 = vsel %vm2121_vm10, %v2516_v1, %v2118_v3  ;;  %v2533_v1 = vld [vmem:[%s2762_s25 + $0x40] sm:$0xff] }
 0x4d0   : > { %2519 = vrcp.f32 %v2052_v58  ;;  %v2127_v39 = vsel %vm2124_vm11, %v2126_v24, %v2122_v55  ;;  %v2155_v14 = vand.u32 2147483648, %v2052_v58  ;;  %v2153_v30 = vand.u32 2147483647, %v2052_v58 }
 0x4d1   : > { %v2178_v32 = vadd.f32 1.0, %v2127_v39  ;;  %vm2149_vm13 = vweird.f32 %v2052_v58 }
 0x4d2   : > { %v2156_v56 = vor.u32 1.1754944e-38, %v2155_v14  ;;  %vm2154_vm15 = vcmp.eq.f32.partialorder %v2153_v30, 8.507059e+37 }
 0x4d3   : > { %2204 = vperm.xlu0 %2470, %v2178_v32   ;;  %2219 = vperm.xlu2 %2468, %v2181_v48  }
 0x4d6   : > { %v2520_v22 = vpop.eup %2519 }
 0x4d7   : > { %v2145_v61 = vmul.f32 %v2520_v22, %v2052_v58  ;;  %vm2150_vm12 = vweird.f32 %v2520_v22 }
 0x4d8   : > { %vm2151_vm14 = vmor %vm2149_vm13, %vm2150_vm12 }
 0x4d9   : > { %v2146_v53 = vsub.f32 1.0, %v2145_v61 }
 0x4db   : > { %v2147_v9 = vmul.f32 %v2520_v22, %v2146_v53 }
 0x4dd   : > { %v2148_v42 = vadd.f32 %v2520_v22, %v2147_v9 }
 0x4df   : > { %v2152_v62 = vsel %vm2151_vm14, %v2520_v22, %v2148_v42 }
 0x4e0   : > { %v2157_v63 = vsel %vm2154_vm15, %v2156_v56, %v2152_v62 }
 0x4e1   : > { %v2180_v0 = vadd.f32 1.0, %v2157_v63 }
 0x4e3   : > { %2214 = vperm.xlu1 %2469, %v2180_v0  }
 0x4ef   : > { %v2185_v47 = vpop.permute.xlu2 %2184 }
 0x4f0   : > { %v2222_v17 = vmul.f32 %v2521_v50, %v2185_v47  ;;  %v2223_v7 = vmul.f32 %v2522_v31, %v2185_v47 }
 0x4f2   : > { %2238 = vst [vmem:[%s3733_s10] sm:$0xff] %v2222_v17 }
 0x4f3   : > { %2239 = vst [vmem:[%s3733_s10 + $0x8] sm:$0xff] %v2223_v7 }
 0x513   : > { %v2190_v20 = vpop.permute.xlu1 %2189 }
 0x514   : > { %v2224_v57 = vmul.f32 %v2523_v6, %v2190_v20  ;;  %v2225_v11 = vmul.f32 %v2524_v15, %v2190_v20 }
 0x516   : > { %2240 = vst [vmem:[%s3733_s10 + $0x10] sm:$0xff] %v2224_v57 }
 0x517   : > { %2241 = vst [vmem:[%s3733_s10 + $0x18] sm:$0xff] %v2225_v11 }
 0x51b   : > { %v2200_v43 = vpop.permute.xlu1 %2199 }
 0x51c   : > { %v2228_v51 = vmul.f32 %v2525_v59, %v2200_v43  ;;  %v2229_v34 = vmul.f32 %v2526_v37, %v2200_v43 }
 0x51d   : > { %v2195_v41 = vpop.permute.xlu2 %2194 }
 0x51e   : > { %2244 = vst [vmem:[%s3733_s10 + $0x30] sm:$0xff] %v2228_v51  ;;  %v2226_v25 = vmul.f32 %v2527_v12, %v2195_v41  ;;  %v2227_v60 = vmul.f32 %v2528_v19, %v2195_v41 }
 0x51f   : > { %2245 = vst [vmem:[%s3733_s10 + $0x38] sm:$0xff] %v2229_v34 }
 0x520   : > { %2242 = vst [vmem:[%s3733_s10 + $0x20] sm:$0xff] %v2226_v25 }
 0x521   : > { %2243 = vst [vmem:[%s3733_s10 + $0x28] sm:$0xff] %v2227_v60 }
 0x525   : > { %v2210_v36 = vpop.permute.xlu2 %2209 }
 0x526   : > { %v2232_v49 = vmul.f32 %v2529_v5, %v2210_v36  ;;  %v2233_v18 = vmul.f32 %v2530_v27, %v2210_v36 }
 0x528   : > { %2248 = vst [vmem:[%s3733_s10 + $0x50] sm:$0xff] %v2232_v49 }
 0x529   : > { %2249 = vst [vmem:[%s3733_s10 + $0x58] sm:$0xff] %v2233_v18 }
 0x52d   : > { %v2220_v21 = vpop.permute.xlu2 %2219 }
 0x52e   : > { %v2236_v46 = vmul.f32 %v2531_v40, %v2220_v21  ;;  %v2237_v13 = vmul.f32 %v2532_v8, %v2220_v21 }
 0x530   : > { %2252 = vst [vmem:[%s3733_s10 + $0x70] sm:$0xff] %v2236_v46 }
 0x531   : > { %2253 = vst [vmem:[%s3733_s10 + $0x78] sm:$0xff] %v2237_v13 }
 0x545   : > { %v2205_v38 = vpop.permute.xlu0 %2204 }
 0x546   : > { %v2230_v4 = vmul.f32 %v2533_v1, %v2205_v38  ;;  %v2231_v23 = vmul.f32 %v2534_v33, %v2205_v38 }
 0x548   : > { %2246 = vst [vmem:[%s3733_s10 + $0x40] sm:$0xff] %v2230_v4 }
 0x549   : > { %2247 = vst [vmem:[%s3733_s10 + $0x48] sm:$0xff] %v2231_v23 }
 0x555   : > { %v2215_v2 = vpop.permute.xlu1 %2214 }
 0x556   : > { %v2234_v10 = vmul.f32 %v2535_v45, %v2215_v2  ;;  %v2235_v28 = vmul.f32 %v2536_v16, %v2215_v2 }
 0x558   : > { %2250 = vst [vmem:[%s3733_s10 + $0x60] sm:$0xff] %v2234_v10 }
 0x559   : > { %2251 = vst [vmem:[%s3733_s10 + $0x68] sm:$0xff] %v2235_v28 }
 0x55a   : > { %2594 = shalt.err (!%p2591_p4)
}
 0x55b   : > { %s2638_s12 = smov 256   ;;  %s2639_s25 = smov 16  }
 0x55c   : > { %2369 = dma.vmem_to_hbm [thread:$0]  (%p2720_p11), %s2268_s29, 2048, %s2270_s13, %s2255_s15, %s2638_s12, %s2638_s12, %s2639_s25  }
 0x55d PF: > { %s2284_s10 = sand.u32 1, %s2621_s18   ;;  %p3824_p7 = scmp.ge.s32.totalorder %s2633_s21, 2 }
 0x55e   : > { %s2285_s14 = scalar_lea.sflag [#allocation4], %s2284_s10 }
 0x55f   : > { %p2376_p5 = pnand %p3824_p7, %p2724_p12 }
 0x561   : > { %p2377_p8 = pneg %p2376_p5 }
 0x563   : > { %2616 = dma.done.wait (%p2377_p8), %s2285_s14, 2048  }
 0x564   : > { %2618 = vsyncadd (%p2377_p8), %s2285_s14, 4294965248  ;;  %p18_p10 = scmp.ge.s32.totalorder %s2695_s24, 4   ;;  %s3825_s18 = smov %s2625_s19 }
 0x565   : > { %s3826_s19 = smov %s2629_s20  ;;  %s3827_s20 = smov %s2707_s27 }
 0x566   : > { %s3828_s21 = smov %s2695_s24  ;;  %20 = sbr.rel (!%p18_p10) target bundleno = 5 (0x5), region = 85 }
 0x56b   :  { %2291 = vsyncpa [#allocation3], 1 }
 0x56c   :  { %2293 = vsyncpa [#allocation3 + $0x1], 1 }
 0x56d   :  { %2294 = vsyncpa [#allocation4], 1 }
 0x56e   :  { %2296 = vsyncpa [#allocation4 + $0x1], 1 }

</bundles_post_ra>
